<compile_context>
chip_gen: v7x
topology: tpu7x:2x2x1
jax: 0.10.0
libtpu: 0.0.40
codegen_flags: <defaults>
</compile_context>

<pallas_src>
import math
import functools

import jax
import jax.numpy as jnp
from jax.experimental import pallas as pl
from jax.experimental.pallas import tpu as pltpu

_EPS = 1e-5  # nn.LayerNorm default eps
_VMEM = pl.BlockSpec(memory_space=pltpu.MemorySpace.VMEM)


# ----------------------------- in-kernel helpers -----------------------------

def _layernorm_f32(x, g, b):
    mu = jnp.mean(x, axis=-1, keepdims=True)
    var = jnp.mean(jnp.square(x - mu), axis=-1, keepdims=True)
    return (x - mu) * jax.lax.rsqrt(var + _EPS) * g + b


def _gelu_tanh(x):
    # tanh-approximate GELU: the transcendental lands on the EUP slot.
    # (tiny numeric difference vs. exact erf-based nn.GELU)
    c = math.sqrt(2.0 / math.pi)
    return 0.5 * x * (1.0 + jnp.tanh(c * (x + 0.044715 * x * x * x)))


def _head_select_matrices(emb, n_heads, hd):
    # sel  (emb, H): sums a head's lanes via one MXU matmul.
    # selT (H, emb): broadcasts a per-head scalar back across its lanes.
    d_s = jax.lax.broadcasted_iota(jnp.int32, (emb, n_heads), 0)
    h_s = jax.lax.broadcasted_iota(jnp.int32, (emb, n_heads), 1)
    sel = jnp.logical_and(d_s >= h_s * hd, d_s < (h_s + 1) * hd).astype(jnp.float32)
    h_t = jax.lax.broadcasted_iota(jnp.int32, (n_heads, emb), 0)
    d_t = jax.lax.broadcasted_iota(jnp.int32, (n_heads, emb), 1)
    selT = jnp.logical_and(d_t >= h_t * hd, d_t < (h_t + 1) * hd).astype(jnp.float32)
    return sel, selT


# --------------------------------- kernels -----------------------------------

def _patch_linear_kernel(x_ref, w_ref, b_ref, o_ref):
    y = jnp.dot(x_ref[...].astype(jnp.bfloat16), w_ref[...].astype(jnp.bfloat16),
                preferred_element_type=jnp.float32) + b_ref[...].astype(jnp.float32)
    o_ref[...] = y.astype(o_ref.dtype)


def _attn_block_kernel(x_ref, vecs_ref, wqkv_ref, wo_ref, o_ref, *, batch, seq, n_heads):
    # Fused: LayerNorm -> q/k/v projections -> MHA over batch axis -> out proj -> +residual
    emb = x_ref.shape[-1]
    hd = emb // n_heads
    scale = 1.0 / math.sqrt(hd)

    x = x_ref[...].astype(jnp.float32)              # (batch*seq, emb), batch-major rows
    vecs = vecs_ref[...].astype(jnp.float32)        # (6, emb) = [ln_g, ln_b, bq, bk, bv, bo]
    ln_g, ln_b = vecs[0:1, :], vecs[1:2, :]
    bq, bk, bv, bo = vecs[2:3, :], vecs[3:4, :], vecs[4:5, :], vecs[5:6, :]

    xn = _layernorm_f32(x, ln_g, ln_b).astype(jnp.bfloat16)

    wq = wqkv_ref[0].astype(jnp.bfloat16)
    wk = wqkv_ref[1].astype(jnp.bfloat16)
    wv = wqkv_ref[2].astype(jnp.bfloat16)
    q = jnp.dot(xn, wq, preferred_element_type=jnp.float32) + bq   # (R, emb)
    k = jnp.dot(xn, wk, preferred_element_type=jnp.float32) + bk
    v = jnp.dot(xn, wv, preferred_element_type=jnp.float32) + bv

    sel, selT = _head_select_matrices(emb, n_heads, hd)
    wo = wo_ref[...].astype(jnp.bfloat16)

    # nn.MultiheadAttention with batch_first=False on a (B, N, D) tensor:
    # attention mixes across the batch axis (length `batch`) independently per token.
    qs = [q[i * seq:(i + 1) * seq, :] * scale for i in range(batch)]
    ks = [k[j * seq:(j + 1) * seq, :] for j in range(batch)]
    vs = [v[j * seq:(j + 1) * seq, :] for j in range(batch)]

    for i in range(batch):
        # per-head scores for every key index j, all heads at once (MXU matmul)
        s_ij = [jnp.dot(qs[i] * ks[j], sel, preferred_element_type=jnp.float32)
                for j in range(batch)]              # each (seq, H)
        m = s_ij[0]
        for j in range(1, batch):
            m = jnp.maximum(m, s_ij[j])
        e_ij = [jnp.exp(s - m) for s in s_ij]
        den = e_ij[0]
        for j in range(1, batch):
            den = den + e_ij[j]
        inv = pl.reciprocal(den, approx=True)       # EUP slot, no VPU divide

        acc = jnp.dot(e_ij[0] * inv, selT, preferred_element_type=jnp.float32) * vs[0]
        for j in range(1, batch):
            w_full = jnp.dot(e_ij[j] * inv, selT, preferred_element_type=jnp.float32)
            acc = acc + w_full * vs[j]

        out_i = jnp.dot(acc.astype(jnp.bfloat16), wo, preferred_element_type=jnp.float32) + bo
        # residual add folded into the kernel store
        o_ref[i * seq:(i + 1) * seq, :] = (x[i * seq:(i + 1) * seq, :] + out_i).astype(o_ref.dtype)


def _mlp_block_kernel(x_ref, vecs_ref, w1_ref, w2_ref, o_ref):
    # Fused: LayerNorm -> Linear -> GELU -> Linear -> +residual  (Dropout = identity in eval)
    x = x_ref[...].astype(jnp.float32)
    vecs = vecs_ref[...].astype(jnp.float32)        # (4, emb) = [ln_g, ln_b, b1, b2]
    ln_g, ln_b, b1, b2 = vecs[0:1, :], vecs[1:2, :], vecs[2:3, :], vecs[3:4, :]

    xn = _layernorm_f32(x, ln_g, ln_b).astype(jnp.bfloat16)
    h = jnp.dot(xn, w1_ref[...].astype(jnp.bfloat16), preferred_element_type=jnp.float32) + b1
    h = _gelu_tanh(h)
    y = jnp.dot(h.astype(jnp.bfloat16), w2_ref[...].astype(jnp.bfloat16),
                preferred_element_type=jnp.float32) + b2
    o_ref[...] = (x + y).astype(o_ref.dtype)


def _head_kernel(x_ref, vecs_ref, w_ref, b_ref, o_ref):
    # Fused: LayerNorm -> classification Linear
    x = x_ref[...].astype(jnp.float32)
    vecs = vecs_ref[...].astype(jnp.float32)        # (2, emb) = [ln_g, ln_b]
    xn = _layernorm_f32(x, vecs[0:1, :], vecs[1:2, :])
    y = jnp.dot(xn.astype(jnp.bfloat16), w_ref[...].astype(jnp.bfloat16),
                preferred_element_type=jnp.float32) + b_ref[...].astype(jnp.float32)
    o_ref[...] = y.astype(o_ref.dtype)


# ------------------------------ pallas wrappers -------------------------------
# TODO(synk): at production sizes (emb>=256, B*seq in the thousands) add a row grid
# (256-512 row tiles x full feature dim) with dimension_semantics=("parallel",) and a
# vmem_limit sized for v7x's 64 MiB; at the toy (8,128)-unaligned shapes used here a
# full-array VMEM block is the only legal BlockSpec, so the kernels stay single-shot.

def pallas_patch_embed(x2d, w, b):
    m, n = x2d.shape[0], w.shape[1]
    return pl.pallas_call(
        _patch_linear_kernel,
        out_shape=jax.ShapeDtypeStruct((m, n), jnp.float32),
        in_specs=[_VMEM, _VMEM, _VMEM],
        out_specs=_VMEM,
    )(x2d, w, b)


def pallas_attn_block(x2d, vecs, w_qkv, w_out, *, batch, seq, n_heads):
    return pl.pallas_call(
        functools.partial(_attn_block_kernel, batch=batch, seq=seq, n_heads=n_heads),
        out_shape=jax.ShapeDtypeStruct(x2d.shape, jnp.float32),
        in_specs=[_VMEM, _VMEM, _VMEM, _VMEM],
        out_specs=_VMEM,
    )(x2d, vecs, w_qkv, w_out)


def pallas_mlp_block(x2d, vecs, w1, w2):
    return pl.pallas_call(
        _mlp_block_kernel,
        out_shape=jax.ShapeDtypeStruct(x2d.shape, jnp.float32),
        in_specs=[_VMEM, _VMEM, _VMEM, _VMEM],
        out_specs=_VMEM,
    )(x2d, vecs, w1, w2)


def pallas_head(x_cls, vecs, w, b):
    m, n = x_cls.shape[0], w.shape[1]
    return pl.pallas_call(
        _head_kernel,
        out_shape=jax.ShapeDtypeStruct((m, n), jnp.float32),
        in_specs=[_VMEM, _VMEM, _VMEM, _VMEM],
        out_specs=_VMEM,
    )(x_cls, vecs, w, b)


# --------------------------------- parameters ---------------------------------

def init_vit_params(key, ch, img_size, patch_size, emb_dim, n_layers, out_dim):
    def nrm(k, shape, scale=0.02):
        return scale * jax.random.normal(k, shape, dtype=jnp.float32)

    num_patches = (img_size // patch_size) ** 2
    patch_in = ch * patch_size * patch_size
    keys = jax.random.split(key, 4 + n_layers)
    params = {
        "patch_w": nrm(keys[0], (patch_in, emb_dim)),
        "patch_b": jnp.zeros((1, emb_dim), jnp.float32),
        "pos": jax.random.normal(keys[1], (1, num_patches + 1, emb_dim), jnp.float32),
        "cls": jax.random.uniform(keys[2], (1, 1, emb_dim), jnp.float32),
        # rows = [ln_gamma, ln_beta]
        "head_vecs": jnp.concatenate([jnp.ones((1, emb_dim), jnp.float32),
                                      jnp.zeros((1, emb_dim), jnp.float32)], axis=0),
        "head_w": nrm(keys[3], (emb_dim, out_dim)),
        "head_b": jnp.zeros((1, out_dim), jnp.float32),
        "layers": [],
    }
    for li in range(n_layers):
        k1, k2, k3, k4 = jax.random.split(keys[4 + li], 4)
        attn_vecs = jnp.concatenate([
            jnp.ones((1, emb_dim), jnp.float32),    # ln1 gamma
            jnp.zeros((5, emb_dim), jnp.float32),   # ln1 beta, bq, bk, bv, b_out
        ], axis=0)
        mlp_vecs = jnp.concatenate([
            jnp.ones((1, emb_dim), jnp.float32),    # ln2 gamma
            jnp.zeros((3, emb_dim), jnp.float32),   # ln2 beta, b1, b2
        ], axis=0)
        params["layers"].append({
            "attn_vecs": attn_vecs,
            "w_qkv": nrm(k1, (3, emb_dim, emb_dim)),   # MHA in_proj, stacked q/k/v (lane-aligned)
            "w_out": nrm(k2, (emb_dim, emb_dim)),      # MHA out_proj
            "mlp_vecs": mlp_vecs,
            "w1": nrm(k3, (emb_dim, emb_dim)),         # FeedForward hidden = emb
            "w2": nrm(k4, (emb_dim, emb_dim)),
        })
    return params


# ---------------------------------- forward -----------------------------------

def vit_forward(img, params, *, patch_size, n_heads):
    B, C, H, W = img.shape
    ph, pw = H // patch_size, W // patch_size
    emb = params["patch_w"].shape[1]

    # einops 'b c (h p1) (w p2) -> b (h w) (p1 p2 c)'  (pure layout glue, XLA)
    x = img.reshape(B, C, ph, patch_size, pw, patch_size)
    x = x.transpose(0, 2, 4, 3, 5, 1).reshape(B, ph * pw, patch_size * patch_size * C)
    n = ph * pw

    # patch embedding linear
    x = pallas_patch_embed(x.reshape(B * n, -1), params["patch_w"], params["patch_b"])
    x = x.reshape(B, n, emb)

    # cls token + positional embedding (tiny one-time layout glue, XLA)
    cls = jnp.broadcast_to(params["cls"], (B, 1, emb))
    x = jnp.concatenate([cls, x], axis=1)
    seq = n + 1
    x = x + params["pos"][:, :seq]

    # activations stay as 2-D (B*seq, emb) batch-major rows for all fused block kernels
    x2 = x.reshape(B * seq, emb)
    for lp in params["layers"]:
        # ResidualAdd(PreNorm(Attention)) -- one fused pallas_call
        x2 = pallas_attn_block(x2, lp["attn_vecs"], lp["w_qkv"], lp["w_out"],
                               batch=B, seq=seq, n_heads=n_heads)
        # ResidualAdd(PreNorm(FeedForward)) -- one fused pallas_call
        x2 = pallas_mlp_block(x2, lp["mlp_vecs"], lp["w1"], lp["w2"])

    # classification head on the cls token (fused LN + Linear)
    x_cls = x2.reshape(B, seq, emb)[:, 0, :]
    return pallas_head(x_cls, params["head_vecs"], params["head_w"], params["head_b"])


# ----------------------------------- main --------------------------------------

if __name__ == "__main__":
    # small config consistent with the module's forward
    B, CH, IMG, PATCH = 2, 3, 16, 4
    EMB, LAYERS, HEADS, OUT = 32, 2, 2, 8

    key = jax.random.PRNGKey(0)
    kimg, kparam = jax.random.split(key)
    img = jax.random.normal(kimg, (B, CH, IMG, IMG), dtype=jnp.float32)
    params = init_vit_params(kparam, CH, IMG, PATCH, EMB, LAYERS, OUT)

    fwd = jax.jit(functools.partial(vit_forward, patch_size=PATCH, n_heads=HEADS))
    out = fwd(img, params)
    jax.block_until_ready(out)
    assert out.shape == (B, OUT) and out.dtype == jnp.float32
    print("KERNEL_OK")
</pallas_src>

<mosaic_0001>
module attributes {stable_mosaic.version = 11 : i64} {
  func.func @_patch_linear_kernel(%arg0: memref<32x48xf32, #tpu.memory_space<vmem>>, %arg1: memref<48x32xf32, #tpu.memory_space<vmem>>, %arg2: memref<1x32xf32, #tpu.memory_space<vmem>>, %arg3: memref<32x32xf32, #tpu.memory_space<vmem>>) attributes {dimension_semantics = [], scalar_prefetch = 0 : i64, scratch_operands = 0 : i64, tpu.core_type = #tpu.core_type<tc>} {
    %c0 = arith.constant 0 : index
    %c0_0 = arith.constant 0 : index
    %0 = vector.load %arg0[%c0, %c0_0] : memref<32x48xf32, #tpu.memory_space<vmem>>, vector<32x48xf32>
    %1 = arith.truncf %0 : vector<32x48xf32> to vector<32x48xbf16>
    %c0_1 = arith.constant 0 : index
    %c0_2 = arith.constant 0 : index
    %2 = vector.load %arg1[%c0_1, %c0_2] : memref<48x32xf32, #tpu.memory_space<vmem>>, vector<48x32xf32>
    %3 = arith.truncf %2 : vector<48x32xf32> to vector<48x32xbf16>
    %cst = arith.constant dense<0.000000e+00> : vector<32x32xf32>
    %4 = tpu.matmul %1, %3, %cst {dimension_numbers = #tpu.dot_dimension_numbers<[1], [0], [0], [1], [0, 0, 1, 1], [], []>} : vector<32x48xbf16>, vector<48x32xbf16>, vector<32x32xf32> -> vector<32x32xf32>
    %c0_3 = arith.constant 0 : index
    %c0_4 = arith.constant 0 : index
    %5 = vector.load %arg2[%c0_3, %c0_4] : memref<1x32xf32, #tpu.memory_space<vmem>>, vector<1x32xf32>
    %6 = vector.broadcast %5 : vector<1x32xf32> to vector<32x32xf32>
    %7 = arith.addf %4, %6 : vector<32x32xf32>
    %c0_5 = arith.constant 0 : index
    %c0_6 = arith.constant 0 : index
    %8 = vector.load %arg3[%c0_5, %c0_6] : memref<32x32xf32, #tpu.memory_space<vmem>>, vector<32x32xf32>
    tpu.vector_store %arg3[%c0_5, %c0_6], %7 {strides = array<i32>} : memref<32x32xf32, #tpu.memory_space<vmem>>, vector<32x32xf32>,
    return
  }
}

module attributes {stable_mosaic.version = 11 : i64} {
  func.func @_mlp_block_kernel(%arg0: memref<34x32xf32, #tpu.memory_space<vmem>>, %arg1: memref<4x32xf32, #tpu.memory_space<vmem>>, %arg2: memref<32x32xf32, #tpu.memory_space<vmem>>, %arg3: memref<32x32xf32, #tpu.memory_space<vmem>>, %arg4: memref<34x32xf32, #tpu.memory_space<vmem>>) attributes {dimension_semantics = [], scalar_prefetch = 0 : i64, scratch_operands = 0 : i64, tpu.core_type = #tpu.core_type<tc>} {
    %c0 = arith.constant 0 : index
    %c0_0 = arith.constant 0 : index
    %0 = vector.load %arg0[%c0, %c0_0] : memref<34x32xf32, #tpu.memory_space<vmem>>, vector<34x32xf32>
    %c0_1 = arith.constant 0 : index
    %c0_2 = arith.constant 0 : index
    %1 = vector.load %arg1[%c0_1, %c0_2] : memref<4x32xf32, #tpu.memory_space<vmem>>, vector<4x32xf32>
    %2 = vector.extract_strided_slice %1 {offsets = [0, 0], sizes = [1, 32], strides = [1, 1]} : vector<4x32xf32> to vector<1x32xf32>
    %3 = vector.extract_strided_slice %1 {offsets = [1, 0], sizes = [1, 32], strides = [1, 1]} : vector<4x32xf32> to vector<1x32xf32>
    %4 = vector.extract_strided_slice %1 {offsets = [2, 0], sizes = [1, 32], strides = [1, 1]} : vector<4x32xf32> to vector<1x32xf32>
    %5 = vector.extract_strided_slice %1 {offsets = [3, 0], sizes = [1, 32], strides = [1, 1]} : vector<4x32xf32> to vector<1x32xf32>
    %cst = arith.constant dense<0.000000e+00> : vector<34xf32>
    %6 = vector.multi_reduction <add>, %0, %cst [1] : vector<34x32xf32> to vector<34xf32>
    %7 = vector.shape_cast %6 : vector<34xf32> to vector<34x1xf32>
    %cst_3 = arith.constant 3.200000e+01 : f32
    %8 = vector.broadcast %cst_3 : f32 to vector<34x1xf32>
    %9 = arith.divf %7, %8 : vector<34x1xf32>
    %10 = vector.broadcast %9 : vector<34x1xf32> to vector<34x32xf32>
    %11 = arith.subf %0, %10 : vector<34x32xf32>
    %12 = arith.mulf %11, %11 : vector<34x32xf32>
    %cst_4 = arith.constant dense<0.000000e+00> : vector<34xf32>
    %13 = vector.multi_reduction <add>, %12, %cst_4 [1] : vector<34x32xf32> to vector<34xf32>
    %14 = vector.shape_cast %13 : vector<34xf32> to vector<34x1xf32>
    %cst_5 = arith.constant 3.200000e+01 : f32
    %15 = vector.broadcast %cst_5 : f32 to vector<34x1xf32>
    %16 = arith.divf %14, %15 : vector<34x1xf32>
    %17 = vector.broadcast %9 : vector<34x1xf32> to vector<34x32xf32>
    %18 = arith.subf %0, %17 : vector<34x32xf32>
    %cst_6 = arith.constant 9.99999974E-6 : f32
    %19 = vector.broadcast %cst_6 : f32 to vector<34x1xf32>
    %20 = arith.addf %16, %19 : vector<34x1xf32>
    %21 = math.rsqrt %20 : vector<34x1xf32>
    %22 = vector.broadcast %21 : vector<34x1xf32> to vector<34x32xf32>
    %23 = arith.mulf %18, %22 : vector<34x32xf32>
    %24 = vector.broadcast %2 : vector<1x32xf32> to vector<34x32xf32>
    %25 = arith.mulf %23, %24 : vector<34x32xf32>
    %26 = vector.broadcast %3 : vector<1x32xf32> to vector<34x32xf32>
    %27 = arith.addf %25, %26 : vector<34x32xf32>
    %28 = arith.truncf %27 : vector<34x32xf32> to vector<34x32xbf16>
    %c0_7 = arith.constant 0 : index
    %c0_8 = arith.constant 0 : index
    %29 = vector.load %arg2[%c0_7, %c0_8] : memref<32x32xf32, #tpu.memory_space<vmem>>, vector<32x32xf32>
    %30 = arith.truncf %29 : vector<32x32xf32> to vector<32x32xbf16>
    %cst_9 = arith.constant dense<0.000000e+00> : vector<34x32xf32>
    %31 = tpu.matmul %28, %30, %cst_9 {dimension_numbers = #tpu.dot_dimension_numbers<[1], [0], [0], [1], [0, 0, 1, 1], [], []>} : vector<34x32xbf16>, vector<32x32xbf16>, vector<34x32xf32> -> vector<34x32xf32>
    %32 = vector.broadcast %4 : vector<1x32xf32> to vector<34x32xf32>
    %33 = arith.addf %31, %32 : vector<34x32xf32>
    %cst_10 = arith.constant 5.000000e-01 : f32
    %34 = vector.broadcast %cst_10 : f32 to vector<34x32xf32>
    %35 = arith.mulf %34, %33 : vector<34x32xf32>
    %cst_11 = arith.constant 4.471500e-02 : f32
    %36 = vector.broadcast %cst_11 : f32 to vector<34x32xf32>
    %37 = arith.mulf %36, %33 : vector<34x32xf32>
    %38 = arith.mulf %37, %33 : vector<34x32xf32>
    %39 = arith.mulf %38, %33 : vector<34x32xf32>
    %40 = arith.addf %33, %39 : vector<34x32xf32>
    %cst_12 = arith.constant 0.797884583 : f32
    %41 = vector.broadcast %cst_12 : f32 to vector<34x32xf32>
    %42 = arith.mulf %41, %40 : vector<34x32xf32>
    %43 = math.tanh %42 : vector<34x32xf32>
    %cst_13 = arith.constant 1.000000e+00 : f32
    %44 = vector.broadcast %cst_13 : f32 to vector<34x32xf32>
    %45 = arith.addf %44, %43 : vector<34x32xf32>
    %46 = arith.mulf %35, %45 : vector<34x32xf32>
    %47 = arith.truncf %46 : vector<34x32xf32> to vector<34x32xbf16>
    %c0_14 = arith.constant 0 : index
    %c0_15 = arith.constant 0 : index
    %48 = vector.load %arg3[%c0_14, %c0_15] : memref<32x32xf32, #tpu.memory_space<vmem>>, vector<32x32xf32>
    %49 = arith.truncf %48 : vector<32x32xf32> to vector<32x32xbf16>
    %cst_16 = arith.constant dense<0.000000e+00> : vector<34x32xf32>
    %50 = tpu.matmul %47, %49, %cst_16 {dimension_numbers = #tpu.dot_dimension_numbers<[1], [0], [0], [1], [0, 0, 1, 1], [], []>} : vector<34x32xbf16>, vector<32x32xbf16>, vector<34x32xf32> -> vector<34x32xf32>
    %51 = vector.broadcast %5 : vector<1x32xf32> to vector<34x32xf32>
    %52 = arith.addf %50, %51 : vector<34x32xf32>
    %53 = arith.addf %0, %52 : vector<34x32xf32>
    %c0_17 = arith.constant 0 : index
    %c0_18 = arith.constant 0 : index
    %54 = vector.load %arg4[%c0_17, %c0_18] : memref<34x32xf32, #tpu.memory_space<vmem>>, vector<34x32xf32>
    tpu.vector_store %arg4[%c0_17, %c0_18], %53 {strides = array<i32>} : memref<34x32xf32, #tpu.memory_space<vmem>>, vector<34x32xf32>,
    return
  }
}

module attributes {stable_mosaic.version = 11 : i64} {
  func.func @_attn_block_kernel(%arg0: memref<34x32xf32, #tpu.memory_space<vmem>>, %arg1: memref<6x32xf32, #tpu.memory_space<vmem>>, %arg2: memref<3x32x32xf32, #tpu.memory_space<vmem>>, %arg3: memref<32x32xf32, #tpu.memory_space<vmem>>, %arg4: memref<34x32xf32, #tpu.memory_space<vmem>>) attributes {dimension_semantics = [], scalar_prefetch = 0 : i64, scratch_operands = 0 : i64, tpu.core_type = #tpu.core_type<tc>} {
    %c0 = arith.constant 0 : index
    %c0_0 = arith.constant 0 : index
    %0 = vector.load %arg0[%c0, %c0_0] : memref<34x32xf32, #tpu.memory_space<vmem>>, vector<34x32xf32>
    %c0_1 = arith.constant 0 : index
    %c0_2 = arith.constant 0 : index
    %1 = vector.load %arg1[%c0_1, %c0_2] : memref<6x32xf32, #tpu.memory_space<vmem>>, vector<6x32xf32>
    %2 = vector.extract_strided_slice %1 {offsets = [0, 0], sizes = [1, 32], strides = [1, 1]} : vector<6x32xf32> to vector<1x32xf32>
    %3 = vector.extract_strided_slice %1 {offsets = [1, 0], sizes = [1, 32], strides = [1, 1]} : vector<6x32xf32> to vector<1x32xf32>
    %4 = vector.extract_strided_slice %1 {offsets = [2, 0], sizes = [1, 32], strides = [1, 1]} : vector<6x32xf32> to vector<1x32xf32>
    %5 = vector.extract_strided_slice %1 {offsets = [3, 0], sizes = [1, 32], strides = [1, 1]} : vector<6x32xf32> to vector<1x32xf32>
    %6 = vector.extract_strided_slice %1 {offsets = [4, 0], sizes = [1, 32], strides = [1, 1]} : vector<6x32xf32> to vector<1x32xf32>
    %7 = vector.extract_strided_slice %1 {offsets = [5, 0], sizes = [1, 32], strides = [1, 1]} : vector<6x32xf32> to vector<1x32xf32>
    %cst = arith.constant dense<0.000000e+00> : vector<34xf32>
    %8 = vector.multi_reduction <add>, %0, %cst [1] : vector<34x32xf32> to vector<34xf32>
    %9 = vector.shape_cast %8 : vector<34xf32> to vector<34x1xf32>
    %cst_3 = arith.constant 3.200000e+01 : f32
    %10 = vector.broadcast %cst_3 : f32 to vector<34x1xf32>
    %11 = arith.divf %9, %10 : vector<34x1xf32>
    %12 = vector.broadcast %11 : vector<34x1xf32> to vector<34x32xf32>
    %13 = arith.subf %0, %12 : vector<34x32xf32>
    %14 = arith.mulf %13, %13 : vector<34x32xf32>
    %cst_4 = arith.constant dense<0.000000e+00> : vector<34xf32>
    %15 = vector.multi_reduction <add>, %14, %cst_4 [1] : vector<34x32xf32> to vector<34xf32>
    %16 = vector.shape_cast %15 : vector<34xf32> to vector<34x1xf32>
    %cst_5 = arith.constant 3.200000e+01 : f32
    %17 = vector.broadcast %cst_5 : f32 to vector<34x1xf32>
    %18 = arith.divf %16, %17 : vector<34x1xf32>
    %19 = vector.broadcast %11 : vector<34x1xf32> to vector<34x32xf32>
    %20 = arith.subf %0, %19 : vector<34x32xf32>
    %cst_6 = arith.constant 9.99999974E-6 : f32
    %21 = vector.broadcast %cst_6 : f32 to vector<34x1xf32>
    %22 = arith.addf %18, %21 : vector<34x1xf32>
    %23 = math.rsqrt %22 : vector<34x1xf32>
    %24 = vector.broadcast %23 : vector<34x1xf32> to vector<34x32xf32>
    %25 = arith.mulf %20, %24 : vector<34x32xf32>
    %26 = vector.broadcast %2 : vector<1x32xf32> to vector<34x32xf32>
    %27 = arith.mulf %25, %26 : vector<34x32xf32>
    %28 = vector.broadcast %3 : vector<1x32xf32> to vector<34x32xf32>
    %29 = arith.addf %27, %28 : vector<34x32xf32>
    %30 = arith.truncf %29 : vector<34x32xf32> to vector<34x32xbf16>
    %c0_7 = arith.constant 0 : index
    %c0_8 = arith.constant 0 : index
    %c0_9 = arith.constant 0 : index
    %31 = vector.load %arg2[%c0_7, %c0_8, %c0_9] : memref<3x32x32xf32, #tpu.memory_space<vmem>>, vector<1x32x32xf32>
    %32 = vector.shape_cast %31 : vector<1x32x32xf32> to vector<32x32xf32>
    %33 = arith.truncf %32 : vector<32x32xf32> to vector<32x32xbf16>
    %c1 = arith.constant 1 : index
    %c0_10 = arith.constant 0 : index
    %c0_11 = arith.constant 0 : index
    %34 = vector.load %arg2[%c1, %c0_10, %c0_11] : memref<3x32x32xf32, #tpu.memory_space<vmem>>, vector<1x32x32xf32>
    %35 = vector.shape_cast %34 : vector<1x32x32xf32> to vector<32x32xf32>
    %36 = arith.truncf %35 : vector<32x32xf32> to vector<32x32xbf16>
    %c2 = arith.constant 2 : index
    %c0_12 = arith.constant 0 : index
    %c0_13 = arith.constant 0 : index
    %37 = vector.load %arg2[%c2, %c0_12, %c0_13] : memref<3x32x32xf32, #tpu.memory_space<vmem>>, vector<1x32x32xf32>
    %38 = vector.shape_cast %37 : vector<1x32x32xf32> to vector<32x32xf32>
    %39 = arith.truncf %38 : vector<32x32xf32> to vector<32x32xbf16>
    %cst_14 = arith.constant dense<0.000000e+00> : vector<34x32xf32>
    %40 = tpu.matmul %30, %33, %cst_14 {dimension_numbers = #tpu.dot_dimension_numbers<[1], [0], [0], [1], [0, 0, 1, 1], [], []>} : vector<34x32xbf16>, vector<32x32xbf16>, vector<34x32xf32> -> vector<34x32xf32>
    %41 = vector.broadcast %4 : vector<1x32xf32> to vector<34x32xf32>
    %42 = arith.addf %40, %41 : vector<34x32xf32>
    %cst_15 = arith.constant dense<0.000000e+00> : vector<34x32xf32>
    %43 = tpu.matmul %30, %36, %cst_15 {dimension_numbers = #tpu.dot_dimension_numbers<[1], [0], [0], [1], [0, 0, 1, 1], [], []>} : vector<34x32xbf16>, vector<32x32xbf16>, vector<34x32xf32> -> vector<34x32xf32>
    %44 = vector.broadcast %5 : vector<1x32xf32> to vector<34x32xf32>
    %45 = arith.addf %43, %44 : vector<34x32xf32>
    %cst_16 = arith.constant dense<0.000000e+00> : vector<34x32xf32>
    %46 = tpu.matmul %30, %39, %cst_16 {dimension_numbers = #tpu.dot_dimension_numbers<[1], [0], [0], [1], [0, 0, 1, 1], [], []>} : vector<34x32xbf16>, vector<32x32xbf16>, vector<34x32xf32> -> vector<34x32xf32>
    %47 = vector.broadcast %6 : vector<1x32xf32> to vector<34x32xf32>
    %48 = arith.addf %46, %47 : vector<34x32xf32>
    %49 = tpu.iota {dimensions = array<i32: 0>} : vector<32x2xi32>
    %50 = tpu.iota {dimensions = array<i32: 1>} : vector<32x2xi32>
    %c16_i32 = arith.constant 16 : i32
    %51 = vector.broadcast %c16_i32 : i32 to vector<32x2xi32>
    %52 = arith.muli %50, %51 : vector<32x2xi32>
    %53 = arith.cmpi sge, %49, %52 : vector<32x2xi32>
    %c1_i32 = arith.constant 1 : i32
    %54 = vector.broadcast %c1_i32 : i32 to vector<32x2xi32>
    %55 = arith.addi %50, %54 : vector<32x2xi32>
    %c16_i32_17 = arith.constant 16 : i32
    %56 = vector.broadcast %c16_i32_17 : i32 to vector<32x2xi32>
    %57 = arith.muli %55, %56 : vector<32x2xi32>
    %58 = arith.cmpi slt, %49, %57 : vector<32x2xi32>
    %59 = arith.andi %53, %58 : vector<32x2xi1>
    %60 = arith.extui %59 : vector<32x2xi1> to vector<32x2xi32>
    %61 = arith.sitofp %60 : vector<32x2xi32> to vector<32x2xf32>
    %62 = tpu.iota {dimensions = array<i32: 0>} : vector<2x32xi32>
    %63 = tpu.iota {dimensions = array<i32: 1>} : vector<2x32xi32>
    %c16_i32_18 = arith.constant 16 : i32
    %64 = vector.broadcast %c16_i32_18 : i32 to vector<2x32xi32>
    %65 = arith.muli %62, %64 : vector<2x32xi32>
    %66 = arith.cmpi sge, %63, %65 : vector<2x32xi32>
    %c1_i32_19 = arith.constant 1 : i32
    %67 = vector.broadcast %c1_i32_19 : i32 to vector<2x32xi32>
    %68 = arith.addi %62, %67 : vector<2x32xi32>
    %c16_i32_20 = arith.constant 16 : i32
    %69 = vector.broadcast %c16_i32_20 : i32 to vector<2x32xi32>
    %70 = arith.muli %68, %69 : vector<2x32xi32>
    %71 = arith.cmpi slt, %63, %70 : vector<2x32xi32>
    %72 = arith.andi %66, %71 : vector<2x32xi1>
    %73 = arith.extui %72 : vector<2x32xi1> to vector<2x32xi32>
    %74 = arith.sitofp %73 : vector<2x32xi32> to vector<2x32xf32>
    %c0_21 = arith.constant 0 : index
    %c0_22 = arith.constant 0 : index
    %75 = vector.load %arg3[%c0_21, %c0_22] : memref<32x32xf32, #tpu.memory_space<vmem>>, vector<32x32xf32>
    %76 = arith.truncf %75 : vector<32x32xf32> to vector<32x32xbf16>
    %77 = vector.extract_strided_slice %42 {offsets = [0, 0], sizes = [17, 32], strides = [1, 1]} : vector<34x32xf32> to vector<17x32xf32>
    %cst_23 = arith.constant 2.500000e-01 : f32
    %78 = vector.broadcast %cst_23 : f32 to vector<17x32xf32>
    %79 = arith.mulf %77, %78 : vector<17x32xf32>
    %80 = vector.extract_strided_slice %42 {offsets = [17, 0], sizes = [17, 32], strides = [1, 1]} : vector<34x32xf32> to vector<17x32xf32>
    %cst_24 = arith.constant 2.500000e-01 : f32
    %81 = vector.broadcast %cst_24 : f32 to vector<17x32xf32>
    %82 = arith.mulf %80, %81 : vector<17x32xf32>
    %83 = vector.extract_strided_slice %45 {offsets = [0, 0], sizes = [17, 32], strides = [1, 1]} : vector<34x32xf32> to vector<17x32xf32>
    %84 = vector.extract_strided_slice %45 {offsets = [17, 0], sizes = [17, 32], strides = [1, 1]} : vector<34x32xf32> to vector<17x32xf32>
    %85 = vector.extract_strided_slice %48 {offsets = [0, 0], sizes = [17, 32], strides = [1, 1]} : vector<34x32xf32> to vector<17x32xf32>
    %86 = vector.extract_strided_slice %48 {offsets = [17, 0], sizes = [17, 32], strides = [1, 1]} : vector<34x32xf32> to vector<17x32xf32>
    %87 = arith.mulf %79, %83 : vector<17x32xf32>
    %cst_25 = arith.constant dense<0.000000e+00> : vector<17x2xf32>
    %88 = tpu.matmul %87, %61, %cst_25 {dimension_numbers = #tpu.dot_dimension_numbers<[1], [0], [0], [1], [0, 0, 1, 1], [], []>} : vector<17x32xf32>, vector<32x2xf32>, vector<17x2xf32> -> vector<17x2xf32>
    %89 = arith.mulf %79, %84 : vector<17x32xf32>
    %cst_26 = arith.constant dense<0.000000e+00> : vector<17x2xf32>
    %90 = tpu.matmul %89, %61, %cst_26 {dimension_numbers = #tpu.dot_dimension_numbers<[1], [0], [0], [1], [0, 0, 1, 1], [], []>} : vector<17x32xf32>, vector<32x2xf32>, vector<17x2xf32> -> vector<17x2xf32>
    %91 = arith.maximumf %88, %90 : vector<17x2xf32>
    %92 = arith.subf %88, %91 : vector<17x2xf32>
    %93 = math.exp %92 : vector<17x2xf32>
    %94 = arith.subf %90, %91 : vector<17x2xf32>
    %95 = math.exp %94 : vector<17x2xf32>
    %96 = arith.addf %93, %95 : vector<17x2xf32>
    %97 = tpu.reciprocal %96 {approx = true} : vector<17x2xf32> -> vector<17x2xf32>
    %98 = arith.mulf %93, %97 : vector<17x2xf32>
    %cst_27 = arith.constant dense<0.000000e+00> : vector<17x32xf32>
    %99 = tpu.matmul %98, %74, %cst_27 {dimension_numbers = #tpu.dot_dimension_numbers<[1], [0], [0], [1], [0, 0, 1, 1], [], []>} : vector<17x2xf32>, vector<2x32xf32>, vector<17x32xf32> -> vector<17x32xf32>
    %100 = arith.mulf %99, %85 : vector<17x32xf32>
    %101 = arith.mulf %95, %97 : vector<17x2xf32>
    %cst_28 = arith.constant dense<0.000000e+00> : vector<17x32xf32>
    %102 = tpu.matmul %101, %74, %cst_28 {dimension_numbers = #tpu.dot_dimension_numbers<[1], [0], [0], [1], [0, 0, 1, 1], [], []>} : vector<17x2xf32>, vector<2x32xf32>, vector<17x32xf32> -> vector<17x32xf32>
    %103 = arith.mulf %102, %86 : vector<17x32xf32>
    %104 = arith.addf %100, %103 : vector<17x32xf32>
    %105 = arith.truncf %104 : vector<17x32xf32> to vector<17x32xbf16>
    %cst_29 = arith.constant dense<0.000000e+00> : vector<17x32xf32>
    %106 = tpu.matmul %105, %76, %cst_29 {dimension_numbers = #tpu.dot_dimension_numbers<[1], [0], [0], [1], [0, 0, 1, 1], [], []>} : vector<17x32xbf16>, vector<32x32xbf16>, vector<17x32xf32> -> vector<17x32xf32>
    %107 = vector.broadcast %7 : vector<1x32xf32> to vector<17x32xf32>
    %108 = arith.addf %106, %107 : vector<17x32xf32>
    %109 = vector.extract_strided_slice %0 {offsets = [0, 0], sizes = [17, 32], strides = [1, 1]} : vector<34x32xf32> to vector<17x32xf32>
    %110 = arith.addf %109, %108 : vector<17x32xf32>
    %c0_30 = arith.constant 0 : index
    %c0_31 = arith.constant 0 : index
    %111 = vector.load %arg4[%c0_30, %c0_31] : memref<34x32xf32, #tpu.memory_space<vmem>>, vector<17x32xf32>
    tpu.vector_store %arg4[%c0_30, %c0_31], %110 {strides = array<i32>} : memref<34x32xf32, #tpu.memory_space<vmem>>, vector<17x32xf32>,
    %112 = arith.mulf %82, %83 : vector<17x32xf32>
    %cst_32 = arith.constant dense<0.000000e+00> : vector<17x2xf32>
    %113 = tpu.matmul %112, %61, %cst_32 {dimension_numbers = #tpu.dot_dimension_numbers<[1], [0], [0], [1], [0, 0, 1, 1], [], []>} : vector<17x32xf32>, vector<32x2xf32>, vector<17x2xf32> -> vector<17x2xf32>
    %114 = arith.mulf %82, %84 : vector<17x32xf32>
    %cst_33 = arith.constant dense<0.000000e+00> : vector<17x2xf32>
    %115 = tpu.matmul %114, %61, %cst_33 {dimension_numbers = #tpu.dot_dimension_numbers<[1], [0], [0], [1], [0, 0, 1, 1], [], []>} : vector<17x32xf32>, vector<32x2xf32>, vector<17x2xf32> -> vector<17x2xf32>
    %116 = arith.maximumf %113, %115 : vector<17x2xf32>
    %117 = arith.subf %113, %116 : vector<17x2xf32>
    %118 = math.exp %117 : vector<17x2xf32>
    %119 = arith.subf %115, %116 : vector<17x2xf32>
    %120 = math.exp %119 : vector<17x2xf32>
    %121 = arith.addf %118, %120 : vector<17x2xf32>
    %122 = tpu.reciprocal %121 {approx = true} : vector<17x2xf32> -> vector<17x2xf32>
    %123 = arith.mulf %118, %122 : vector<17x2xf32>
    %cst_34 = arith.constant dense<0.000000e+00> : vector<17x32xf32>
    %124 = tpu.matmul %123, %74, %cst_34 {dimension_numbers = #tpu.dot_dimension_numbers<[1], [0], [0], [1], [0, 0, 1, 1], [], []>} : vector<17x2xf32>, vector<2x32xf32>, vector<17x32xf32> -> vector<17x32xf32>
    %125 = arith.mulf %124, %85 : vector<17x32xf32>
    %126 = arith.mulf %120, %122 : vector<17x2xf32>
    %cst_35 = arith.constant dense<0.000000e+00> : vector<17x32xf32>
    %127 = tpu.matmul %126, %74, %cst_35 {dimension_numbers = #tpu.dot_dimension_numbers<[1], [0], [0], [1], [0, 0, 1, 1], [], []>} : vector<17x2xf32>, vector<2x32xf32>, vector<17x32xf32> -> vector<17x32xf32>
    %128 = arith.mulf %127, %86 : vector<17x32xf32>
    %129 = arith.addf %125, %128 : vector<17x32xf32>
    %130 = arith.truncf %129 : vector<17x32xf32> to vector<17x32xbf16>
    %cst_36 = arith.constant dense<0.000000e+00> : vector<17x32xf32>
    %131 = tpu.matmul %130, %76, %cst_36 {dimension_numbers = #tpu.dot_dimension_numbers<[1], [0], [0], [1], [0, 0, 1, 1], [], []>} : vector<17x32xbf16>, vector<32x32xbf16>, vector<17x32xf32> -> vector<17x32xf32>
    %132 = vector.broadcast %7 : vector<1x32xf32> to vector<17x32xf32>
    %133 = arith.addf %131, %132 : vector<17x32xf32>
    %134 = vector.extract_strided_slice %0 {offsets = [17, 0], sizes = [17, 32], strides = [1, 1]} : vector<34x32xf32> to vector<17x32xf32>
    %135 = arith.addf %134, %133 : vector<17x32xf32>
    %c17 = arith.constant 17 : index
    %c0_37 = arith.constant 0 : index
    %136 = vector.load %arg4[%c17, %c0_37] : memref<34x32xf32, #tpu.memory_space<vmem>>, vector<17x32xf32>
    tpu.vector_store %arg4[%c17, %c0_37], %135 {strides = array<i32>} : memref<34x32xf32, #tpu.memory_space<vmem>>, vector<17x32xf32>,
    return
  }
}

module attributes {stable_mosaic.version = 11 : i64} {
  func.func @_head_kernel(%arg0: memref<2x32xf32, #tpu.memory_space<vmem>>, %arg1: memref<2x32xf32, #tpu.memory_space<vmem>>, %arg2: memref<32x8xf32, #tpu.memory_space<vmem>>, %arg3: memref<1x8xf32, #tpu.memory_space<vmem>>, %arg4: memref<2x8xf32, #tpu.memory_space<vmem>>) attributes {dimension_semantics = [], scalar_prefetch = 0 : i64, scratch_operands = 0 : i64, tpu.core_type = #tpu.core_type<tc>} {
    %c0 = arith.constant 0 : index
    %c0_0 = arith.constant 0 : index
    %0 = vector.load %arg0[%c0, %c0_0] : memref<2x32xf32, #tpu.memory_space<vmem>>, vector<2x32xf32>
    %c0_1 = arith.constant 0 : index
    %c0_2 = arith.constant 0 : index
    %1 = vector.load %arg1[%c0_1, %c0_2] : memref<2x32xf32, #tpu.memory_space<vmem>>, vector<2x32xf32>
    %2 = vector.extract_strided_slice %1 {offsets = [0, 0], sizes = [1, 32], strides = [1, 1]} : vector<2x32xf32> to vector<1x32xf32>
    %3 = vector.extract_strided_slice %1 {offsets = [1, 0], sizes = [1, 32], strides = [1, 1]} : vector<2x32xf32> to vector<1x32xf32>
    %cst = arith.constant dense<0.000000e+00> : vector<2xf32>
    %4 = vector.multi_reduction <add>, %0, %cst [1] : vector<2x32xf32> to vector<2xf32>
    %5 = vector.shape_cast %4 : vector<2xf32> to vector<2x1xf32>
    %cst_3 = arith.constant 3.200000e+01 : f32
    %6 = vector.broadcast %cst_3 : f32 to vector<2x1xf32>
    %7 = arith.divf %5, %6 : vector<2x1xf32>
    %8 = vector.broadcast %7 : vector<2x1xf32> to vector<2x32xf32>
    %9 = arith.subf %0, %8 : vector<2x32xf32>
    %10 = arith.mulf %9, %9 : vector<2x32xf32>
    %cst_4 = arith.constant dense<0.000000e+00> : vector<2xf32>
    %11 = vector.multi_reduction <add>, %10, %cst_4 [1] : vector<2x32xf32> to vector<2xf32>
    %12 = vector.shape_cast %11 : vector<2xf32> to vector<2x1xf32>
    %cst_5 = arith.constant 3.200000e+01 : f32
    %13 = vector.broadcast %cst_5 : f32 to vector<2x1xf32>
    %14 = arith.divf %12, %13 : vector<2x1xf32>
    %15 = vector.broadcast %7 : vector<2x1xf32> to vector<2x32xf32>
    %16 = arith.subf %0, %15 : vector<2x32xf32>
    %cst_6 = arith.constant 9.99999974E-6 : f32
    %17 = vector.broadcast %cst_6 : f32 to vector<2x1xf32>
    %18 = arith.addf %14, %17 : vector<2x1xf32>
    %19 = math.rsqrt %18 : vector<2x1xf32>
    %20 = vector.broadcast %19 : vector<2x1xf32> to vector<2x32xf32>
    %21 = arith.mulf %16, %20 : vector<2x32xf32>
    %22 = vector.broadcast %2 : vector<1x32xf32> to vector<2x32xf32>
    %23 = arith.mulf %21, %22 : vector<2x32xf32>
    %24 = vector.broadcast %3 : vector<1x32xf32> to vector<2x32xf32>
    %25 = arith.addf %23, %24 : vector<2x32xf32>
    %26 = arith.truncf %25 : vector<2x32xf32> to vector<2x32xbf16>
    %c0_7 = arith.constant 0 : index
    %c0_8 = arith.constant 0 : index
    %27 = vector.load %arg2[%c0_7, %c0_8] : memref<32x8xf32, #tpu.memory_space<vmem>>, vector<32x8xf32>
    %28 = arith.truncf %27 : vector<32x8xf32> to vector<32x8xbf16>
    %cst_9 = arith.constant dense<0.000000e+00> : vector<2x8xf32>
    %29 = tpu.matmul %26, %28, %cst_9 {dimension_numbers = #tpu.dot_dimension_numbers<[1], [0], [0], [1], [0, 0, 1, 1], [], []>} : vector<2x32xbf16>, vector<32x8xbf16>, vector<2x8xf32> -> vector<2x8xf32>
    %c0_10 = arith.constant 0 : index
    %c0_11 = arith.constant 0 : index
    %30 = vector.load %arg3[%c0_10, %c0_11] : memref<1x8xf32, #tpu.memory_space<vmem>>, vector<1x8xf32>
    %31 = vector.broadcast %30 : vector<1x8xf32> to vector<2x8xf32>
    %32 = arith.addf %29, %31 : vector<2x8xf32>
    %c0_12 = arith.constant 0 : index
    %c0_13 = arith.constant 0 : index
    %33 = vector.load %arg4[%c0_12, %c0_13] : memref<2x8xf32, #tpu.memory_space<vmem>>, vector<2x8xf32>
    tpu.vector_store %arg4[%c0_12, %c0_13], %32 {strides = array<i32>} : memref<2x8xf32, #tpu.memory_space<vmem>>, vector<2x8xf32>,
    return
  }
}

</mosaic_0001>

<bundles_post_ra>
// kernel: vit_forward.8
= control target key start
LH: loop header
LB: loop body
LE: loop exit
PB: predicated region body
PF: predicated region fallthrough
CT: control target
= control target key end

     0   :  { %vm24_vm0 = vcmask 261120   ;;  %vm37_vm1 = vcmask 254976   ;;  %v395_v38 = vmov 0.0   ;;  %vm396_vm2 = vmmov 0   ;;  %s578_s0 = inlined_call_operand.vmem [shape: f32[34,32], index: 0, kind: input, shape index: {}]   ;;  %s579_s2 = inlined_call_operand.vmem [shape: f32[32,32], index: 2, kind: input, shape index: {}]   ;;  %s580_s1 = inlined_call_operand.vmem [shape: f32[4,32], index: 1, kind: input, shape index: {}]   ;;  %s581_s3 = inlined_call_operand.vmem [shape: f32[32,32], index: 3, kind: input, shape index: {}]   ;;  %s582_s4 = inlined_call_operand.vmem [shape: f32[34,32], index: 4, kind: output, shape index: {}]  }
   0x1   :  { %v425_v0 = vld [vmem:[%s578_s0] sm:$0xff]  ;;  %v430_v1 = vld [vmem:[%s578_s0 + $0x10] sm:$0xff]  ;;  %v435_v2 = vld [vmem:[%s578_s0 + $0x8] sm:$0xff]  ;;  %341 = vmatprep.subr.bf16.mxu0 %v395_v38  ;;  %357 = vmatprep.subr.bf16.mxu1 %v395_v38  ;;  %v92_v49 = vlaneseq }
   0x2   :  { %v25_v3 = vsel %vm24_vm0, %v425_v0, 0.0  ;;  %v31_v4 = vsel %vm24_vm0, %v430_v1, 0.0  ;;  %v444_v5 = vld [vmem:[%s578_s0 + $0x18] sm:$0xff]  ;;  %v28_v6 = vsel %vm24_vm0, %v435_v2, 0.0  ;;  %v453_v8 = vld [vmem:[%s578_s0 + $0x20] sm:$0x3]  ;;  %345 = vmatprep.mubr.msk.bf16.mxu0 %vm396_vm2, %v395_v38  ;;  %361 = vmatprep.mubr.msk.bf16.mxu1 %vm396_vm2, %v395_v38 }
   0x3   :  { %26 = vadd.xlane.f32.xlu0 %v25_v3  ;;  %32 = vadd.xlane.f32.xlu1 %v31_v4  ;;  %v34_v7 = vsel %vm24_vm0, %v444_v5, 0.0  ;;  %v38_v9 = vsel %vm37_vm1, %v453_v8, 0.0  ;;  %v113_v35 = vld [vmem:[%s579_s2] sm:$0xff]  ;;  %v114_v36 = vld [vmem:[%s579_s2 + $0x8] sm:$0xff]  ;;  %v115_v39 = vld [vmem:[%s579_s2 + $0x10] sm:$0xff]  ;;  %v506_v55 = vshrl.u32 %v92_v49, 7 }
   0x4   :  { %v117_v37 = vpack.c.bf16 %v114_v36, %v113_v35  ;;  %v116_v40 = vld [vmem:[%s579_s2 + $0x18] sm:$0xff]  ;;  %v512_v60 = vld [vmem:[%s580_s1] sm:$0xf] }
   0x5   :  { %v118_v41 = vpack.c.bf16 %v116_v40, %v115_v39  ;;  %v94_v58 = vsub.s32 0, %v506_v55  ;;  %v103_v3 = vsub.s32 1, %v506_v55 }
   0x6   :  { %342 = vmatpush3.bf16.msra.mxu0 %v117_v37 }
   0x7   :  { %29 = vadd.xlane.f32.xlu0 %v28_v6  ;;  %35 = vadd.xlane.f32.xlu1 %v34_v7  ;;  %v95_v63 = vrot.slane %v512_v60, %v94_v58 }
   0x8   :  { %343 = vmatprep.subr.bf16.mxu0 %v395_v38 }
   0xa   :  { %344 = vmatpush3.bf16.msra.mxu0 %v118_v41 }
   0xb   :  { %39 = vadd.xlane.f32.xlu0 %v38_v9  ;;  %v104_v9 = vrot.slane %v512_v60, %v103_v3 }
  0x90   :  { %v27_v10 = vpop.xlane.xlu0 %26  ;;  %v33_v11 = vpop.xlane.xlu1 %32 }
  0x91   :  { %v42_v12 = vmul.f32 0.03125, %v27_v10  ;;  %v44_v13 = vmul.f32 0.03125, %v33_v11 }
  0x93   :  { %v458_v14 = vsub.f32 %v425_v0, %v42_v12  ;;  %v461_v15 = vsub.f32 %v430_v1, %v44_v13 }
  0x94   :  { %v30_v16 = vpop.xlane.xlu0 %29  ;;  %v36_v17 = vpop.xlane.xlu1 %35 }
  0x95   :  { %v43_v18 = vmul.f32 0.03125, %v30_v16  ;;  %v45_v19 = vmul.f32 0.03125, %v36_v17  ;;  %v52_v20 = vmul.f32 %v458_v14, %v458_v14  ;;  %v54_v21 = vmul.f32 %v461_v15, %v461_v15 }
  0x97   :  { %v468_v22 = vsub.f32 %v435_v2, %v43_v18  ;;  %v471_v23 = vsub.f32 %v444_v5, %v45_v19  ;;  %v57_v24 = vsel %vm24_vm0, %v52_v20, 0.0  ;;  %v63_v27 = vsel %vm24_vm0, %v54_v21, 0.0 }
  0x98   :  { %58 = vadd.xlane.f32.xlu1 %v57_v24  ;;  %v40_v25 = vpop.xlane.xlu0 %39 }
  0x99   :  { %v46_v26 = vmul.f32 0.03125, %v40_v25  ;;  %v53_v28 = vmul.f32 %v468_v22, %v468_v22  ;;  %v55_v29 = vmul.f32 %v471_v23, %v471_v23 }
  0x9b   :  { %v480_v30 = vsub.f32 %v453_v8, %v46_v26  ;;  %v60_v31 = vsel %vm24_vm0, %v53_v28, 0.0  ;;  %v66_v32 = vsel %vm24_vm0, %v55_v29, 0.0  ;;  %v236_v28 = vld [vmem:[%s581_s3] sm:$0xff]  ;;  %v237_v29 = vld [vmem:[%s581_s3 + $0x8] sm:$0xff] }
  0x9c   :  { %64 = vadd.xlane.f32.xlu1 %v63_v27  ;;  %61 = vadd.xlane.f32.xlu0 %v60_v31  ;;  %v238_v31 = vld [vmem:[%s581_s3 + $0x10] sm:$0xff] }
  0x9d   :  { %v56_v33 = vmul.f32 %v480_v30, %v480_v30 }
  0x9f   :  { %v69_v34 = vsel %vm37_vm1, %v56_v33, 0.0 }
  0xa0   :  { %67 = vadd.xlane.f32.xlu0 %v66_v32  ;;  %70 = vadd.xlane.f32.xlu1 %v69_v34  ;;  %v239_v32 = vld [vmem:[%s581_s3 + $0x18] sm:$0xff]  ;;  %v121_v34 = vsub.s32 2, %v506_v55 }
  0xa1   :  { %v241_v33 = vpack.c.bf16 %v239_v32, %v238_v31 }
  0xa2   :  { %v122_v35 = vrot.slane %v512_v60, %v121_v34 }
 0x125   :  { %v59_v42 = vpop.xlane.xlu1 %58 }
 0x126   :  { %v72_v43 = vmul.f32 0.03125, %v59_v42 }
 0x128   :  { %v77_v44 = vadd.f32 1e-05, %v72_v43 }
 0x129   :  { %v65_v45 = vpop.xlane.xlu1 %64  ;;  %v62_v46 = vpop.xlane.xlu0 %61 }
 0x12a   :  { %375 = vrsqrt.f32 %v77_v44  ;;  %v74_v47 = vmul.f32 0.03125, %v65_v45  ;;  %v73_v48 = vmul.f32 0.03125, %v62_v46 }
 0x12c   :  { %v78_v50 = vadd.f32 1e-05, %v73_v48  ;;  %v79_v51 = vadd.f32 1e-05, %v74_v47 }
 0x12d   :  { %v71_v52 = vpop.xlane.xlu1 %70  ;;  %v68_v53 = vpop.xlane.xlu0 %67 }
 0x12e   :  { %v75_v54 = vmul.f32 0.03125, %v68_v53  ;;  %377 = vrsqrt.f32 %v78_v50  ;;  %v76_v56 = vmul.f32 0.03125, %v71_v52 }
 0x12f   :  { %379 = vrsqrt.f32 %v79_v51 }
 0x130   :  { %v80_v57 = vadd.f32 1e-05, %v75_v54  ;;  %v81_v59 = vadd.f32 1e-05, %v76_v56 }
 0x132   :  { %381 = vrsqrt.f32 %v80_v57 }
 0x133   :  { %383 = vrsqrt.f32 %v81_v59 }
 0x134   :  { %v376_v61 = vpop.eup %375 }
 0x135   :  { %v87_v62 = vmul.f32 %v376_v61, %v458_v14 }
 0x137   :  { %v96_v7 = vmul.f32 %v95_v63, %v87_v62 }
 0x138   :  { %v378_v4 = vpop.eup %377 }
 0x139   :  { %v88_v6 = vmul.f32 %v378_v4, %v468_v22  ;;  %v380_v10 = vpop.eup %379  ;;  %v105_v17 = vadd.f32 %v104_v9, %v96_v7 }
 0x13a   :  { %v89_v13 = vmul.f32 %v380_v10, %v461_v15 }
 0x13b   :  { %v97_v11 = vmul.f32 %v95_v63, %v88_v6 }
 0x13c   :  { %v382_v12 = vpop.eup %381  ;;  %v98_v21 = vmul.f32 %v95_v63, %v89_v13 }
 0x13d   :  { %v90_v16 = vmul.f32 %v382_v12, %v471_v23  ;;  %v106_v14 = vadd.f32 %v104_v9, %v97_v11  ;;  %v384_v20 = vpop.eup %383 }
 0x13e   :  { %v91_v22 = vmul.f32 %v384_v20, %v480_v30  ;;  %v107_v25 = vadd.f32 %v104_v9, %v98_v21  ;;  %v240_v30 = vpack.c.bf16 %v237_v29, %v236_v28 }
 0x13f   :  { %v110_v18 = vpack.c.bf16 %v106_v14, %v105_v17  ;;  %v99_v19 = vmul.f32 %v95_v63, %v90_v16 }
 0x140   :  { %v100_v27 = vmul.f32 %v95_v63, %v91_v22  ;;  %358 = vmatpush3.bf16.msra.mxu1 %v240_v30 }
 0x141   :  { %346 = vmatmul.mubr.msk.bf16.vlgmr.msra.gmra.mrb[0].mxu0 %vm24_vm0, %v110_v18  ;;  %v108_v24 = vadd.f32 %v104_v9, %v99_v19  ;;  %359 = vmatprep.subr.bf16.mxu1 %v395_v38 }
 0x142   :  { %349 = vmatprep.mubr.msk.bf16.mxu0 %vm396_vm2, %v395_v38  ;;  %v109_v15 = vadd.f32 %v104_v9, %v100_v27 }
 0x143   :  { %v111_v26 = vpack.c.bf16 %v108_v24, %v107_v25 }
 0x144   :  { %v112_v23 = vpack.c.bf16 %v109_v15, %v109_v15  ;;  %360 = vmatpush3.bf16.msra.mxu1 %v241_v33 }
 0x149   :  { %350 = vmatmul.mubr.msk.bf16.gmra.mrb[4].mxu0 %vm24_vm0, %v111_v26 }
 0x14a   :  { %353 = vmatprep.mubr.msk.bf16.mxu0 %vm396_vm2, %v395_v38 }
 0x151   :  { %354 = vmatmul.mubr.msk.bf16.gmra.mrb[8].mxu0 %vm24_vm0, %v112_v23 }
 0x214   :  { %v166_v36 = vpop.f32.mrb[0].mxu0 }
 0x215   :  { %v167_v37 = vadd.f32 %v166_v36, %v122_v35  ;;  %v347_v39 = vpop.f32.mrb[1].mxu0 }
 0x216   :  { %v169_v40 = vpop.f32.mrb[2].mxu0 }
 0x217   :  { %v193_v41 = vmul.f32 0.044715, %v167_v37  ;;  %v170_v42 = vadd.f32 %v169_v40, %v122_v35  ;;  %v348_v43 = vpop.f32.mrb[3].mxu0  ;;  %v188_v26 = vmul.f32 0.5, %v167_v37 }
 0x219   :  { %v198_v44 = vmul.f32 %v193_v41, %v167_v37  ;;  %v194_v45 = vmul.f32 0.044715, %v170_v42  ;;  %v189_v27 = vmul.f32 0.5, %v170_v42 }
 0x21b   :  { %v203_v46 = vmul.f32 %v198_v44, %v167_v37  ;;  %v199_v47 = vmul.f32 %v194_v45, %v170_v42 }
 0x21c   :  { %v174_v48 = vpop.f32.mrb[4].mxu0 }
 0x21d   :  { %v208_v49 = vadd.f32 %v203_v46, %v167_v37  ;;  %v204_v50 = vmul.f32 %v199_v47, %v170_v42  ;;  %v175_v51 = vadd.f32 %v174_v48, %v122_v35  ;;  %v351_v52 = vpop.f32.mrb[5].mxu0  ;;  %v244_v46 = vsub.s32 3, %v506_v55 }
 0x21e   :  { %v177_v53 = vpop.f32.mrb[6].mxu0 }
 0x21f   :  { %v213_v54 = vmul.f32 0.7978846, %v208_v49  ;;  %v209_v56 = vadd.f32 %v204_v50, %v170_v42  ;;  %v195_v57 = vmul.f32 0.044715, %v175_v51  ;;  %v178_v58 = vadd.f32 %v177_v53, %v122_v35  ;;  %v352_v59 = vpop.f32.mrb[7].mxu0 }
 0x220   :  { %v190_v34 = vmul.f32 0.5, %v175_v51  ;;  %v245_v47 = vrot.slane %v512_v60, %v244_v46 }
 0x221   :  { %385 = vtanh.f32 %v213_v54  ;;  %v214_v61 = vmul.f32 0.7978846, %v209_v56  ;;  %v200_v62 = vmul.f32 %v195_v57, %v175_v51  ;;  %v196_v63 = vmul.f32 0.044715, %v178_v58 }
 0x223   :  { %387 = vtanh.f32 %v214_v61  ;;  %v205_v3 = vmul.f32 %v200_v62, %v175_v51  ;;  %v201_v4 = vmul.f32 %v196_v63, %v178_v58 }
 0x224   :  { %v182_v6 = vpop.f32.mrb[8].mxu0 }
 0x225   :  { %v210_v7 = vadd.f32 %v205_v3, %v175_v51  ;;  %v206_v9 = vmul.f32 %v201_v4, %v178_v58  ;;  %v183_v10 = vadd.f32 %v182_v6, %v122_v35  ;;  %v355_v11 = vpop.f32.mrb[9].mxu0  ;;  %v191_v35 = vmul.f32 0.5, %v178_v58 }
 0x226   :  { %v185_v12 = vpop.f32.mrb[10].mxu0 }
 0x227   :  { %v215_v13 = vmul.f32 0.7978846, %v210_v7  ;;  %v211_v16 = vadd.f32 %v206_v9, %v178_v58  ;;  %v197_v17 = vmul.f32 0.044715, %v183_v10  ;;  %v356_v14 = vpop.f32.mrb[11].mxu0  ;;  %v192_v42 = vmul.f32 0.5, %v183_v10 }
 0x229   :  { %389 = vtanh.f32 %v215_v13  ;;  %v216_v18 = vmul.f32 0.7978846, %v211_v16  ;;  %v202_v19 = vmul.f32 %v197_v17, %v183_v10 }
 0x22b   :  { %v386_v20 = vpop.eup %385  ;;  %391 = vtanh.f32 %v216_v18  ;;  %v207_v21 = vmul.f32 %v202_v19, %v183_v10 }
 0x22c   :  { %v223_v22 = vadd.f32 1.0, %v386_v20 }
 0x22d   :  { %v388_v24 = vpop.eup %387  ;;  %v212_v25 = vadd.f32 %v207_v21, %v183_v10 }
 0x22e   :  { %v224_v15 = vadd.f32 1.0, %v388_v24  ;;  %v228_v28 = vmul.f32 %v223_v22, %v188_v26 }
 0x22f   :  { %v217_v23 = vmul.f32 0.7978846, %v212_v25 }
 0x230   :  { %v229_v29 = vmul.f32 %v224_v15, %v189_v27 }
 0x231   :  { %393 = vtanh.f32 %v217_v23 }
 0x232   :  { %v233_v30 = vpack.c.bf16 %v229_v29, %v228_v28 }
 0x233   :  { %v390_v31 = vpop.eup %389 }
 0x234   :  { %362 = vmatmul.mubr.msk.bf16.vlgmr.msra.gmra.mrb[0].mxu1 %vm24_vm0, %v233_v30  ;;  %v225_v32 = vadd.f32 1.0, %v390_v31 }
 0x235   :  { %v392_v33 = vpop.eup %391  ;;  %365 = vmatprep.mubr.msk.bf16.mxu1 %vm396_vm2, %v395_v38 }
 0x236   :  { %v226_v36 = vadd.f32 1.0, %v392_v33  ;;  %v230_v39 = vmul.f32 %v225_v32, %v190_v34 }
 0x238   :  { %v231_v37 = vmul.f32 %v226_v36, %v191_v35 }
 0x23a   :  { %v234_v40 = vpack.c.bf16 %v231_v37, %v230_v39 }
 0x23b   :  { %v394_v41 = vpop.eup %393 }
 0x23c   :  { %366 = vmatmul.mubr.msk.bf16.gmra.mrb[4].mxu1 %vm24_vm0, %v234_v40  ;;  %v227_v43 = vadd.f32 1.0, %v394_v41 }
 0x23d   :  { %369 = vmatprep.mubr.msk.bf16.mxu1 %vm396_vm2, %v395_v38 }
 0x23e   :  { %v232_v44 = vmul.f32 %v227_v43, %v192_v42 }
 0x240   :  { %v235_v45 = vpack.c.bf16 %v232_v44, %v232_v44 }
 0x244   :  { %370 = vmatmul.mubr.msk.bf16.gmra.mrb[8].mxu1 %vm24_vm0, %v235_v45 }
 0x307   :  { %v289_v48 = vpop.f32.mrb[0].mxu1 }
 0x308   :  { %v290_v49 = vadd.f32 %v289_v48, %v245_v47  ;;  %v363_v50 = vpop.f32.mrb[1].mxu1 }
 0x309   :  { %v292_v51 = vpop.f32.mrb[2].mxu1 }
 0x30a   :  { %v311_v52 = vadd.f32 %v290_v49, %v425_v0  ;;  %v293_v53 = vadd.f32 %v292_v51, %v245_v47  ;;  %v364_v54 = vpop.f32.mrb[3].mxu1 }
 0x30c   :  { %316 = vst.msk [vmem:[%s582_s4] sm:$0xff] %vm24_vm0, %v311_v52  ;;  %v312_v38 = vadd.f32 %v293_v53, %v435_v2 }
 0x30e   :  { %317 = vst.msk [vmem:[%s582_s4 + $0x8] sm:$0xff] %vm24_vm0, %v312_v38 }
 0x30f   :  { %v297_v55 = vpop.f32.mrb[4].mxu1 }
 0x310   :  { %v298_v60 = vadd.f32 %v297_v55, %v245_v47  ;;  %v367_v56 = vpop.f32.mrb[5].mxu1 }
 0x311   :  { %v300_v57 = vpop.f32.mrb[6].mxu1 }
 0x312   :  { %v313_v0 = vadd.f32 %v298_v60, %v430_v1  ;;  %v301_v58 = vadd.f32 %v300_v57, %v245_v47  ;;  %v368_v59 = vpop.f32.mrb[7].mxu1 }
 0x314   :  { %318 = vst.msk [vmem:[%s582_s4 + $0x10] sm:$0xff] %vm24_vm0, %v313_v0  ;;  %v314_v2 = vadd.f32 %v301_v58, %v444_v5 }
 0x316   :  { %319 = vst.msk [vmem:[%s582_s4 + $0x18] sm:$0xff] %vm24_vm0, %v314_v2 }
 0x317   :  { %v305_v61 = vpop.f32.mrb[8].mxu1 }
 0x318   :  { %v306_v62 = vadd.f32 %v305_v61, %v245_v47  ;;  %v371_v63 = vpop.f32.mrb[9].mxu1 }
 0x319   :  { %v308_v3 = vpop.f32.mrb[10].mxu1 }
 0x31a   :  { %v315_v1 = vadd.f32 %v306_v62, %v453_v8  ;;  %v372_v4 = vpop.f32.mrb[11].mxu1 }
 0x31c   :  { %320 = vst.msk [vmem:[%s582_s4 + $0x20] sm:$0x3] %vm37_vm1, %v315_v1 }

// kernel: vit_forward.6
= control target key start
LH: loop header
LB: loop body
LE: loop exit
PB: predicated region body
PF: predicated region fallthrough
CT: control target
= control target key end

     0   :  { %vm37_vm0 = vcmask 392192   ;;  %vm93_vm1 = vcmask 261120   ;;  %s185_s1 = inlined_call_operand.vmem [shape: f32[48,32], index: 1, kind: input, shape index: {}]   ;;  %s186_s0 = inlined_call_operand.vmem [shape: f32[32,48], index: 0, kind: input, shape index: {}]   ;;  %s187_s2 = inlined_call_operand.vmem [shape: f32[1,32], index: 2, kind: input, shape index: {}]   ;;  %s188_s3 = inlined_call_operand.vmem [shape: f32[32,32], index: 3, kind: output, shape index: {}]  }
   0x1   :  { %v21_v0 = vld [vmem:[%s185_s1] sm:$0xff]  ;;  %v22_v1 = vld [vmem:[%s185_s1 + $0x8] sm:$0xff]  ;;  %v23_v2 = vld [vmem:[%s185_s1 + $0x10] sm:$0xff] }
   0x2   :  { %v27_v3 = vpack.c.bf16 %v22_v1, %v21_v0  ;;  %v24_v4 = vld [vmem:[%s185_s1 + $0x18] sm:$0xff]  ;;  %v25_v5 = vld [vmem:[%s185_s1 + $0x20] sm:$0xff]  ;;  %v26_v7 = vld [vmem:[%s185_s1 + $0x28] sm:$0xff] }
   0x3   :  { %v28_v6 = vpack.c.bf16 %v24_v4, %v23_v2  ;;  %v15_v8 = vld [vmem:[%s186_s0] sm:$0xff]  ;;  %v16_v9 = vld [vmem:[%s186_s0 + $0x8] sm:$0xff]  ;;  %v29_v11 = vpack.c.bf16 %v26_v7, %v25_v5  ;;  %v17_v12 = vld [vmem:[%s186_s0 + $0x10] sm:$0xff] }
   0x4   :  { %110 = vmatprep.subr.bf16.mxu0 %v27_v3  ;;  %v19_v10 = vpack.c.bf16 %v16_v9, %v15_v8  ;;  %v18_v13 = vld [vmem:[%s186_s0 + $0x18] sm:$0xff]  ;;  %v102_v15 = vld [vmem:[%s187_s2] ss:$0 sm:$0xff] }
   0x5   :  { %111 = vmatpush3.bf16.msra.mxu0 %v27_v3  ;;  %v20_v14 = vpack.c.bf16 %v18_v13, %v17_v12 }
   0x6   :  { %112 = vmatprep.subr.bf16.mxu0 %v28_v6  ;;  %116 = vmatprep.mubr.msk.bf16.mxu0 %vm37_vm0, %v19_v10 }
   0x9   :  { %113 = vmatpush3.bf16.msra.mxu0 %v28_v6 }
   0xa   :  { %114 = vmatprep.subr.bf16.mxu0 %v29_v11 }
   0xd   :  { %115 = vmatpush3.bf16.msra.mxu0 %v29_v11 }
  0x10   :  { %117 = vmatmul.mubr.msk.bf16.vlgmr.msra.gmra.mrb[0].mxu0 %vm37_vm0, %v20_v14 }
  0xe3   :  { %v118_v16 = vpop.f32.mrb[0].mxu0 }
  0xe4   :  { %v87_v17 = vadd.f32 %v118_v16, %v102_v15  ;;  %v78_v18 = vpop.f32.mrb[1].mxu0 }
  0xe5   :  { %v79_v19 = vadd.f32 %v102_v15, %v78_v18  ;;  %v119_v20 = vpop.f32.mrb[2].mxu0 }
  0xe6   :  { %96 = vst.msk [vmem:[%s188_s3 + $0x10] sm:$0xff] %vm93_vm1, %v87_v17  ;;  %v90_v21 = vadd.f32 %v119_v20, %v102_v15  ;;  %v81_v22 = vpop.f32.mrb[3].mxu0 }
  0xe7   :  { %94 = vst.msk [vmem:[%s188_s3] sm:$0xff] %vm93_vm1, %v79_v19  ;;  %v82_v23 = vadd.f32 %v102_v15, %v81_v22 }
  0xe8   :  { %97 = vst.msk [vmem:[%s188_s3 + $0x18] sm:$0xff] %vm93_vm1, %v90_v21 }
  0xe9   :  { %95 = vst.msk [vmem:[%s188_s3 + $0x8] sm:$0xff] %vm93_vm1, %v82_v23 }

// kernel: vit_forward.11
= control target key start
LH: loop header
LB: loop body
LE: loop exit
PB: predicated region body
PF: predicated region fallthrough
CT: control target
= control target key end

     0   :  { %vm21_vm0 = vcmask 254976   ;;  %s223_s0 = inlined_call_operand.vmem [shape: f32[2,32], index: 0, kind: input, shape index: {}]   ;;  %s224_s1 = inlined_call_operand.vmem [shape: f32[2,32], index: 1, kind: input, shape index: {}]   ;;  %s225_s2 = inlined_call_operand.vmem [shape: f32[32,8], index: 2, kind: input, shape index: {}]   ;;  %s226_s3 = inlined_call_operand.vmem [shape: f32[1,8], index: 3, kind: input, shape index: {}]   ;;  %s227_s4 = inlined_call_operand.hbm [shape: f32[2,8], index: 4, kind: output, shape index: {}]  }
   0x1   :  { %v19_v0 = vld [vmem:[%s223_s0] sm:$0x3] }
   0x2   :  { %9 = vsyncpa [#allocation3], 0  ;;  %v22_v1 = vsel %vm21_vm0, %v19_v0, 0.0  ;;  %v47_v7 = vld [vmem:[%s225_s2] sm:$0xff]  ;;  %v48_v8 = vld [vmem:[%s225_s2 + $0x8] sm:$0xff]  ;;  %v162_v10 = vmov 0.0   ;;  %v36_v16 = vlaneseq }
   0x3   :  { %23 = vadd.xlane.f32.xlu0 %v22_v1  ;;  %v51_v9 = vpack.c.bf16 %v48_v8, %v47_v7  ;;  %125 = vmatprep.subr.bf16.mxu0 %v162_v10  ;;  %v49_v11 = vld [vmem:[%s225_s2 + $0x10] sm:$0xff]  ;;  %v50_v12 = vld [vmem:[%s225_s2 + $0x18] sm:$0xff]  ;;  %vm163_vm1 = vmmov 0   ;;  %v20_v20 = vld [vmem:[%s224_s1] sm:$0x3]  ;;  %vm60_vm2 = vcmask 261120  }
   0x4   :  { %v52_v13 = vpack.c.bf16 %v50_v12, %v49_v11  ;;  %129 = vmatprep.mubr.msk.bf16.mxu0 %vm163_vm1, %v162_v10  ;;  %v37_v18 = vshrl.u32 %v36_v16, 7  ;;  %v120_v29 = vld [vmem:[%s226_s3] ss:$0 sm:$0xff]  ;;  %s164_s27 = smov [#allocation2]   ;;  %vm104_vm3 = vcmask 58368  }
   0x5   :  { %126 = vmatpush3.bf16.msra.mxu0 %v51_v9  ;;  %s112_s28 = sshll.u32 %s164_s27, 4  ;;  %s113_s28 = int_to_ptr.vmem [resolvable:$true] %s112_s28 }
   0x6   :  { %127 = vmatprep.subr.bf16.mxu0 %v162_v10  ;;  %v38_v19 = vsub.s32 0, %v37_v18  ;;  %v43_v21 = vsub.s32 1, %v37_v18  ;;  %s138_s1 = scalar_lea.vmem %s113_s28, 32  ;;  %p143_p1 = scmp.lt.s32.totalorder %s113_s28, %s113_s28 }
   0x7   :  { %p139_p0 = scmp.ne.s32.totalorder %s113_s28, %s138_s1  ;;  %p144_p2 = scmp.lt.s32.totalorder %s138_s1, %s138_s1 }
   0x8   :  { %v39_v22 = vrot.slane %v20_v20, %v38_v19  ;;  %v44_v25 = vrot.slane %v20_v20, %v43_v21 }
   0x9   :  { %128 = vmatpush3.bf16.msra.mxu0 %v52_v13  ;;  %p145_p3 = por %p144_p2, %p143_p1 }
   0xb   :  { %p146_p4 = pnand %p145_p3, %p139_p0 }
  0x90   :  { %v24_v2 = vpop.xlane.xlu0 %23 }
  0x91   :  { %v26_v3 = vmul.f32 0.03125, %v24_v2 }
  0x93   :  { %v27_v4 = vsub.f32 %v19_v0, %v26_v3 }
  0x95   :  { %v28_v5 = vmul.f32 %v27_v4, %v27_v4 }
  0x97   :  { %v29_v6 = vsel %vm21_vm0, %v28_v5, 0.0 }
  0x98   :  { %30 = vadd.xlane.f32.xlu0 %v29_v6 }
 0x125   :  { %v31_v14 = vpop.xlane.xlu0 %30 }
 0x126   :  { %v32_v15 = vmul.f32 0.03125, %v31_v14 }
 0x128   :  { %v33_v17 = vadd.f32 1e-05, %v32_v15 }
 0x12a   :  { %136 = vrsqrt.f32 %v33_v17 }
 0x134   :  { %v137_v23 = vpop.eup %136 }
 0x135   :  { %v35_v24 = vmul.f32 %v137_v23, %v27_v4 }
 0x137   :  { %v40_v26 = vmul.f32 %v39_v22, %v35_v24 }
 0x139   :  { %v45_v27 = vadd.f32 %v44_v25, %v40_v26 }
 0x13b   :  { %v46_v28 = vpack.c.bf16 %v45_v27, %v45_v27 }
 0x13d   :  { %130 = vmatmul.mubr.msk.bf16.vlgmr.msra.gmra.mrb[0].mxu0 %vm60_vm2, %v46_v28 }
 0x210   :  { %v98_v30 = vpop.f32.mrb[0].mxu0 }
 0x211   :  { %v99_v31 = vadd.f32 %v120_v29, %v98_v30  ;;  %v131_v32 = vpop.f32.mrb[1].mxu0 }
 0x212   :  { %v101_v33 = vpop.f32.mrb[2].mxu0 }
 0x213   :  { %v132_v34 = vpop.f32.mrb[3].mxu0  ;;  %105 = vst.msk [vmem:[#allocation2] sm:$0x3] %vm104_vm3, %v99_v31 }
 0x214   :  { %149 = shalt.err (!%p146_p4)
}
 0x215   :  { %s150_s3 = scalar_lea.hbm %s227_s4, 32 }
 0x216   :  { %p151_p5 = scmp.ne.s32.totalorder %s227_s4, %s150_s3  ;;  %p154_p6 = scmp.lt.u32.totalorder %s150_s3, %s227_s4 }
 0x218   :  { %p156_p7 = pnand %p154_p6, %p151_p5 }
 0x21a   :  { %159 = shalt.err (!%p156_p7)
}
 0x21b   :  { %115 = dma.vmem_to_hbm [thread:$0]  %s113_s28, 32, %s227_s4, [#allocation3]  }
 0x21c   :  { %160 = dma.done.wait [#allocation3], 32  }
 0x21d   :  { %161 = vsyncadd [#allocation3], 4294967264 }
 0x21e   :  { %119 = vsyncpa [#allocation3], 1 }

// kernel: vit_forward.7
= control target key start
LH: loop header
LB: loop body
LE: loop exit
PB: predicated region body
PF: predicated region fallthrough
CT: control target
= control target key end

     0   :  { %vm24_vm0 = vcmask 261120   ;;  %vm37_vm1 = vcmask 254976   ;;  %v1761_v40 = vmov 0.0   ;;  %vm1762_vm2 = vmmov 0   ;;  %s2258_s0 = inlined_call_operand.vmem [shape: f32[34,32], index: 0, kind: input, shape index: {}]   ;;  %s2259_s2 = inlined_call_operand.vmem [shape: f32[3,32,32], index: 2, kind: input, shape index: {}]   ;;  %s2260_s1 = inlined_call_operand.vmem [shape: f32[6,32], index: 1, kind: input, shape index: {}]   ;;  %s2261_s3 = inlined_call_operand.vmem [shape: f32[32,32], index: 3, kind: input, shape index: {}]   ;;  %s2262_s4 = inlined_call_operand.vmem [shape: f32[34,32], index: 4, kind: output, shape index: {}]  }
   0x1   :  { %v1793_v0 = vld [vmem:[%s2258_s0] sm:$0xff]  ;;  %v1798_v1 = vld [vmem:[%s2258_s0 + $0x10] sm:$0xff]  ;;  %v1803_v2 = vld [vmem:[%s2258_s0 + $0x8] sm:$0xff]  ;;  %1508 = vmatprep.subr.bf16.mxu0 %v1761_v40  ;;  %1524 = vmatprep.subr.bf16.mxu1 %v1761_v40  ;;  %v1763_v48 = vmov 0.0|0.0   ;;  %v92_v56 = vlaneseq }
   0x2   :  { %v25_v3 = vsel %vm24_vm0, %v1793_v0, 0.0  ;;  %v31_v4 = vsel %vm24_vm0, %v1798_v1, 0.0  ;;  %v21_v5 = vld [vmem:[%s2258_s0 + $0x18] sm:$0xff]  ;;  %v28_v6 = vsel %vm24_vm0, %v1803_v2, 0.0  ;;  %v22_v8 = vld [vmem:[%s2258_s0 + $0x20] sm:$0x3]  ;;  %1512 = vmatprep.mubr.msk.bf16.mxu0 %vm1762_vm2, %v1761_v40  ;;  %1528 = vmatprep.mubr.msk.bf16.mxu1 %vm1762_vm2, %v1761_v40 }
   0x3   :  { %26 = vadd.xlane.f32.xlu0 %v25_v3  ;;  %32 = vadd.xlane.f32.xlu1 %v31_v4  ;;  %v34_v7 = vsel %vm24_vm0, %v21_v5, 0.0  ;;  %v38_v9 = vsel %vm37_vm1, %v22_v8, 0.0  ;;  %v113_v35 = vld [vmem:[%s2259_s2] sm:$0xff]  ;;  %v114_v36 = vld [vmem:[%s2259_s2 + $0x8] sm:$0xff]  ;;  %v115_v42 = vld [vmem:[%s2259_s2 + $0x10] sm:$0xff]  ;;  %v1881_v61 = vand.u32 127, %v92_v56 }
   0x4   :  { %v1371_v37 = vld [vmem:[%s2259_s2 + $0x20] sm:$0xff]  ;;  %v117_v38 = vpack.c.bf16 %v114_v36, %v113_v35  ;;  %v1372_v39 = vld [vmem:[%s2259_s2 + $0x28] sm:$0xff]  ;;  %v116_v43 = vld [vmem:[%s2259_s2 + $0x18] sm:$0xff]  ;;  %v1883_v63 = vshrl.u32 %v92_v56, 7 }
   0x5   :  { %v124_v41 = vpack.c.bf16 %v1372_v39, %v1371_v37  ;;  %v1373_v44 = vld [vmem:[%s2259_s2 + $0x30] sm:$0xff]  ;;  %v118_v45 = vpack.c.bf16 %v116_v43, %v115_v42  ;;  %v1374_v46 = vld [vmem:[%s2259_s2 + $0x38] sm:$0xff] }
   0x6   :  { %1509 = vmatpush3.bf16.msra.mxu0 %v117_v38  ;;  %v125_v47 = vpack.c.bf16 %v1374_v46, %v1373_v44  ;;  %v1764_v46 = vmov 1.0|1.0  }
   0x7   :  { %29 = vadd.xlane.f32.xlu0 %v28_v6  ;;  %35 = vadd.xlane.f32.xlu1 %v34_v7  ;;  %v94_v6 = vsub.s32 0, %v1883_v63 }
   0x8   :  { %1525 = vmatpush3.bf16.msra.mxu1 %v124_v41  ;;  %1510 = vmatprep.subr.bf16.mxu0 %v1761_v40 }
   0x9   :  { %1526 = vmatprep.subr.bf16.mxu1 %v1761_v40 }
   0xa   :  { %1511 = vmatpush3.bf16.msra.mxu0 %v118_v45 }
   0xb   :  { %39 = vadd.xlane.f32.xlu0 %v38_v9  ;;  %1540 = vmatprep.subr.bf16.mxu0 %v1761_v40 }
   0xc   :  { %1527 = vmatpush3.bf16.msra.mxu1 %v125_v47 }
   0xd   :  { %1684 = vmatprep.subr.bf16.mxu1 %v1763_v48 }
  0x90   :  { %v27_v10 = vpop.xlane.xlu0 %26  ;;  %v33_v11 = vpop.xlane.xlu1 %32 }
  0x91   :  { %v42_v12 = vmul.f32 0.03125, %v27_v10  ;;  %v44_v13 = vmul.f32 0.03125, %v33_v11  ;;  %v103_v10 = vsub.s32 1, %v1883_v63  ;;  %v329_v11 = vmul.u32 16, %v1881_v61 }
  0x93   :  { %v1820_v14 = vsub.f32 %v1793_v0, %v42_v12  ;;  %v1823_v15 = vsub.f32 %v1798_v1, %v44_v13  ;;  %vm330_vm3 = vcmp.ge.s32.totalorder %v1883_v63, %v329_v11 }
  0x94   :  { %v30_v16 = vpop.xlane.xlu0 %29  ;;  %v36_v17 = vpop.xlane.xlu1 %35 }
  0x95   :  { %v43_v18 = vmul.f32 0.03125, %v30_v16  ;;  %v45_v19 = vmul.f32 0.03125, %v36_v17  ;;  %v52_v20 = vmul.f32 %v1820_v14, %v1820_v14  ;;  %v54_v21 = vmul.f32 %v1823_v15, %v1823_v15 }
  0x96   :  { %v324_v17 = vadd.s32 8, %v1883_v63 }
  0x97   :  { %v1830_v22 = vsub.f32 %v1803_v2, %v43_v18  ;;  %v1832_v23 = vsub.f32 %v21_v5, %v45_v19  ;;  %v57_v24 = vsel %vm24_vm0, %v52_v20, 0.0  ;;  %v63_v27 = vsel %vm24_vm0, %v54_v21, 0.0 }
  0x98   :  { %58 = vadd.xlane.f32.xlu1 %v57_v24  ;;  %v40_v25 = vpop.xlane.xlu0 %39  ;;  %v334_v5 = vadd.s32 1, %v1881_v61  ;;  %v325_v20 = vadd.s32 16, %v1883_v63  ;;  %vm331_vm5 = vcmp.ge.s32.totalorder %v324_v17, %v329_v11 }
  0x99   :  { %v46_v26 = vmul.f32 0.03125, %v40_v25  ;;  %v53_v28 = vmul.f32 %v1830_v22, %v1830_v22  ;;  %v55_v29 = vmul.f32 %v1832_v23, %v1832_v23  ;;  %v326_v25 = vadd.s32 24, %v1883_v63 }
  0x9a   :  { %v335_v12 = vmul.u32 16, %v334_v5  ;;  %vm332_vm9 = vcmp.ge.s32.totalorder %v325_v20, %v329_v11 }
  0x9b   :  { %v1840_v30 = vsub.f32 %v22_v8, %v46_v26  ;;  %v60_v31 = vsel %vm24_vm0, %v53_v28, 0.0  ;;  %v66_v32 = vsel %vm24_vm0, %v55_v29, 0.0  ;;  %v1890_v8 = vld [vmem:[%s2260_s1] sm:$0x3f]  ;;  %vm333_vm11 = vcmp.ge.s32.totalorder %v326_v25, %v329_v11 }
  0x9c   :  { %64 = vadd.xlane.f32.xlu1 %v63_v27  ;;  %61 = vadd.xlane.f32.xlu0 %v60_v31  ;;  %v95_v16 = vrot.slane %v1890_v8, %v94_v6  ;;  %v104_v19 = vrot.slane %v1890_v8, %v103_v10  ;;  %vm336_vm4 = vcmp.lt.s32.totalorder %v1883_v63, %v335_v12  ;;  %v1375_v29 = vld [vmem:[%s2259_s2 + $0x40] sm:$0xff] }
  0x9d   :  { %v56_v33 = vmul.f32 %v1840_v30, %v1840_v30  ;;  %vm337_vm6 = vcmp.lt.s32.totalorder %v324_v17, %v335_v12  ;;  %vm1903_vm7 = vmand %vm330_vm3, %vm336_vm4  ;;  %vm338_vm10 = vcmp.lt.s32.totalorder %v325_v20, %v335_v12  ;;  %vm339_vm12 = vcmp.lt.s32.totalorder %v326_v25, %v335_v12 }
  0x9e   :  { %vm341_vm8 = vmand %vm331_vm5, %vm337_vm6  ;;  %vm872_vm4 = vcmask 1040384   ;;  %vm466_vm5 = vcmask 1046528  }
  0x9f   :  { %v69_v34 = vsel %vm37_vm1, %v56_v33, 0.0  ;;  %vm1917_vm13 = vmpackc.low %vm341_vm8, %vm1903_vm7 }
  0xa0   :  { %67 = vadd.xlane.f32.xlu0 %v66_v32  ;;  %70 = vadd.xlane.f32.xlu1 %v69_v34  ;;  %vm1928_vm14 = vmand %vm332_vm9, %vm338_vm10  ;;  %vm607_vm9 = vcmask 1041408   ;;  %vm597_vm10 = vcmask 15360  }
  0xa1   :  { %vm343_vm15 = vmand %vm333_vm11, %vm339_vm12  ;;  %vm868_vm11 = vcmask 253952  }
  0xa2   :  { %vm1946_vm3 = vmpackc.low %vm343_vm15, %vm1928_vm14 }
 0x125   :  { %v59_v49 = vpop.xlane.xlu1 %58 }
 0x126   :  { %v72_v50 = vmul.f32 0.03125, %v59_v49 }
 0x128   :  { %v77_v51 = vadd.f32 1e-05, %v72_v50 }
 0x129   :  { %v65_v52 = vpop.xlane.xlu1 %64  ;;  %v62_v53 = vpop.xlane.xlu0 %61 }
 0x12a   :  { %1712 = vrsqrt.f32 %v77_v51  ;;  %v74_v54 = vmul.f32 0.03125, %v65_v52  ;;  %v73_v55 = vmul.f32 0.03125, %v62_v53  ;;  %v135_v53 = vsub.s32 2, %v1883_v63 }
 0x12c   :  { %v78_v57 = vadd.f32 1e-05, %v73_v55  ;;  %v79_v58 = vadd.f32 1e-05, %v74_v54  ;;  %v204_v54 = vsub.s32 3, %v1883_v63  ;;  %v1979_v55 = vrot.slane %v1890_v8, %v135_v53 }
 0x12d   :  { %v71_v59 = vpop.xlane.xlu1 %70  ;;  %v68_v60 = vpop.xlane.xlu0 %67 }
 0x12e   :  { %v75_v62 = vmul.f32 0.03125, %v68_v60  ;;  %1714 = vrsqrt.f32 %v78_v57  ;;  %v76_v3 = vmul.f32 0.03125, %v71_v59  ;;  %v1982_v56 = vrot.slane %v1890_v8, %v204_v54 }
 0x12f   :  { %1716 = vrsqrt.f32 %v79_v58 }
 0x130   :  { %v80_v4 = vadd.f32 1e-05, %v75_v62  ;;  %v81_v7 = vadd.f32 1e-05, %v76_v3 }
 0x132   :  { %1718 = vrsqrt.f32 %v80_v4 }
 0x133   :  { %1720 = vrsqrt.f32 %v81_v7 }
 0x134   :  { %v1713_v9 = vpop.eup %1712 }
 0x135   :  { %v87_v13 = vmul.f32 %v1713_v9, %v1820_v14 }
 0x137   :  { %v96_v24 = vmul.f32 %v95_v16, %v87_v13 }
 0x138   :  { %v1715_v18 = vpop.eup %1714 }
 0x139   :  { %v88_v21 = vmul.f32 %v1715_v18, %v1830_v22  ;;  %v1717_v14 = vpop.eup %1716  ;;  %v1376_v22 = vld [vmem:[%s2259_s2 + $0x48] sm:$0xff]  ;;  %v105_v33 = vadd.f32 %v104_v19, %v96_v24 }
 0x13a   :  { %v89_v31 = vmul.f32 %v1717_v14, %v1823_v15  ;;  %v131_v37 = vpack.c.bf16 %v1376_v22, %v1375_v29  ;;  %v1377_v15 = vld [vmem:[%s2259_s2 + $0x50] sm:$0xff] }
 0x13b   :  { %v97_v26 = vmul.f32 %v95_v16, %v88_v21 }
 0x13c   :  { %v1719_v28 = vpop.eup %1718  ;;  %v98_v42 = vmul.f32 %v95_v16, %v89_v31 }
 0x13d   :  { %v90_v32 = vmul.f32 %v1719_v28, %v1832_v23  ;;  %v106_v34 = vadd.f32 %v104_v19, %v97_v26  ;;  %v1721_v39 = vpop.eup %1720  ;;  %v1378_v23 = vld [vmem:[%s2259_s2 + $0x58] sm:$0xff] }
 0x13e   :  { %v91_v43 = vmul.f32 %v1721_v39, %v1840_v30  ;;  %v132_v45 = vpack.c.bf16 %v1378_v23, %v1377_v15  ;;  %v107_v49 = vadd.f32 %v104_v19, %v98_v42 }
 0x13f   :  { %v110_v35 = vpack.c.bf16 %v106_v34, %v105_v33  ;;  %v99_v36 = vmul.f32 %v95_v16, %v90_v32 }
 0x140   :  { %v100_v50 = vmul.f32 %v95_v16, %v91_v43 }
 0x141   :  { %1513 = vmatmul.mubr.msk.bf16.vlgmr.msra.gmra.mrb[0].mxu0 %vm24_vm0, %v110_v35  ;;  %1529 = vmatmul.mubr.msk.bf16.vlgmr.msra.gmra.mrb[0].mxu1 %vm24_vm0, %v110_v35  ;;  %v108_v44 = vadd.f32 %v104_v19, %v99_v36 }
 0x142   :  { %1516 = vmatprep.mubr.msk.bf16.mxu0 %vm1762_vm2, %v1761_v40  ;;  %1532 = vmatprep.mubr.msk.bf16.mxu1 %vm1762_vm2, %v1761_v40  ;;  %v109_v51 = vadd.f32 %v104_v19, %v100_v50 }
 0x143   :  { %1541 = vmatpush3.bf16.msra.mxu0 %v131_v37  ;;  %1686 = vmatpush3.bf16.msk.msra.mxu1 %vm1917_vm13, %v1764_v46  ;;  %v111_v30 = vpack.c.bf16 %v108_v44, %v107_v49 }
 0x144   :  { %1542 = vmatprep.subr.bf16.mxu0 %v1761_v40  ;;  %1687 = vmatprep.subr.bf16.mxu1 %v1763_v48  ;;  %v112_v52 = vpack.c.bf16 %v109_v51, %v109_v51 }
 0x147   :  { %1543 = vmatpush3.bf16.msra.mxu0 %v132_v45  ;;  %1689 = vmatpush3.bf16.msk.msra.mxu1 %vm1946_vm3, %v1764_v46 }
 0x148   :  { %1690 = vmatprep.subr.bf16.mxu1 %v1763_v48  ;;  %1590 = vmatprep.subr.mxu0 %v1761_v40 }
 0x149   :  { %1517 = vmatmul.mubr.msk.bf16.gmra.mrb[4].mxu0 %vm24_vm0, %v111_v30  ;;  %1533 = vmatmul.mubr.msk.bf16.gmra.mrb[4].mxu1 %vm24_vm0, %v111_v30 }
 0x14a   :  { %1520 = vmatprep.mubr.msk.bf16.mxu0 %vm1762_vm2, %v1761_v40  ;;  %1536 = vmatprep.mubr.msk.bf16.mxu1 %vm1762_vm2, %v1761_v40 }
 0x151   :  { %1521 = vmatmul.mubr.msk.bf16.gmra.mrb[8].mxu0 %vm24_vm0, %v112_v52  ;;  %1537 = vmatmul.mubr.msk.bf16.gmra.mrb[8].mxu1 %vm24_vm0, %v112_v52 }
 0x152   :  { %1544 = vmatprep.mubr.msk.bf16.mxu0 %vm1762_vm2, %v1761_v40  ;;  %1564 = vmatprep.mubr.msk.f32.mxu1 %vm1762_vm2, %v1761_v40 }
 0x159   :  { %1545 = vmatmul.mubr.msk.bf16.vlgmr.msra.gmra.mrb[12].mxu0 %vm24_vm0, %v110_v35 }
 0x15a   :  { %1548 = vmatprep.mubr.msk.bf16.mxu0 %vm1762_vm2, %v1761_v40 }
 0x161   :  { %1549 = vmatmul.mubr.msk.bf16.gmra.mrb[16].mxu0 %vm24_vm0, %v111_v30 }
 0x162   :  { %1552 = vmatprep.mubr.msk.bf16.mxu0 %vm1762_vm2, %v1761_v40 }
 0x169   :  { %1553 = vmatmul.mubr.msk.bf16.gmra.mrb[20].mxu0 %vm24_vm0, %v112_v52 }
 0x16a   :  { %1592 = vmatprep.mubr.msk.f32.mxu0 %vm1762_vm2, %v1761_v40 }
 0x214   :  { %v180_v57 = vpop.f32.mrb[0].mxu0  ;;  %v240_v58 = vpop.f32.mrb[0].mxu1 }
 0x215   :  { %v181_v59 = vadd.f32 %v180_v57, %v1979_v55  ;;  %v241_v60 = vadd.f32 %v240_v58, %v1982_v56  ;;  %v1514_v62 = vpop.f32.mrb[1].mxu0  ;;  %v1530_v3 = vpop.f32.mrb[1].mxu1 }
 0x216   :  { %v183_v4 = vpop.f32.mrb[2].mxu0  ;;  %v243_v5 = vpop.f32.mrb[2].mxu1 }
 0x217   :  { %v366_v6 = vmul.f32 0.25, %v181_v59  ;;  %v184_v7 = vadd.f32 %v183_v4, %v1979_v55  ;;  %v244_v9 = vadd.f32 %v243_v5, %v1982_v56  ;;  %v1515_v10 = vpop.f32.mrb[3].mxu0  ;;  %v1531_v11 = vpop.f32.mrb[3].mxu1  ;;  %v873_v13 = vrot.slane %v241_v60, 7 }
 0x219   :  { %v371_v12 = vmul.f32 %v366_v6, %v241_v60  ;;  %v1988_v16 = vmul.f32 0.25, %v184_v7  ;;  %v874_v17 = vrot.slane %v244_v9, 7 }
 0x21b   :  { %v372_v18 = vmul.f32 %v1988_v16, %v244_v9  ;;  %1565 = vmatmul.mubr.msk.f32.vlgmr.msra.gmra.mrb[12].mxu1 %vm24_vm0, %v371_v12  ;;  %v875_v19 = vsel %vm872_vm4, %v873_v13, %v874_v17 }
 0x21c   :  { %v188_v20 = vpop.f32.mrb[4].mxu0  ;;  %v248_v21 = vpop.f32.mrb[4].mxu1  ;;  %1692 = vmatpush3.bf16.msk.msra.mxu1 %vm1917_vm13, %v1764_v46  ;;  %1567 = vmatprep.mubr.msk.f32.mxu1 %vm1762_vm2, %v1761_v40 }
 0x21d   :  { %v189_v24 = vadd.f32 %v188_v20, %v1979_v55  ;;  %v249_v14 = vadd.f32 %v248_v21, %v1982_v56  ;;  %v1518_v25 = vpop.f32.mrb[5].mxu0  ;;  %v1534_v26 = vpop.f32.mrb[5].mxu1  ;;  %1693 = vmatprep.subr.bf16.mxu1 %v1763_v48 }
 0x21e   :  { %v191_v27 = vpop.f32.mrb[6].mxu0  ;;  %v251_v28 = vpop.f32.mrb[6].mxu1 }
 0x21f   :  { %v368_v29 = vmul.f32 0.25, %v189_v24  ;;  %v876_v22 = vrot.slane %v249_v14, 7  ;;  %v192_v31 = vadd.f32 %v191_v27, %v1979_v55  ;;  %v1519_v32 = vpop.f32.mrb[7].mxu0  ;;  %v1535_v33 = vpop.f32.mrb[7].mxu1  ;;  %1568 = vmatmul.mubr.msk.f32.gmra.mrb[14].mxu1 %vm24_vm0, %v372_v18  ;;  %v252_v34 = vadd.f32 %v251_v28, %v1982_v56 }
 0x220   :  { %1570 = vmatprep.mubr.msk.f32.mxu1 %vm1762_vm2, %v1761_v40  ;;  %1695 = vmatpush3.bf16.msk.msra.mxu1 %vm1946_vm3, %v1764_v46  ;;  %v467_v15 = vrot.slane %v249_v14, 1 }
 0x221   :  { %v881_v35 = vmul.f32 %v873_v13, %v368_v29  ;;  %v373_v36 = vmul.f32 %v368_v29, %v249_v14  ;;  %v369_v37 = vmul.f32 0.25, %v192_v31  ;;  %v877_v39 = vsel %vm872_vm4, %v874_v17, %v876_v22  ;;  %1601 = vmatprep.subr.mxu1 %v1761_v40 }
 0x222   :  { %v468_v23 = vrot.slane %v252_v34, 1 }
 0x223   :  { %v882_v41 = vmul.f32 %v875_v19, %v369_v37  ;;  %v978_v42 = vmul.f32 %v369_v37, %v252_v34  ;;  %1571 = vmatmul.mubr.msk.f32.gmra.mrb[16].mxu1 %vm24_vm0, %v373_v36  ;;  %v887_v43 = vrot.slane %v881_v35, 1  ;;  %v982_v44 = vrot.slane %v373_v36, 1 }
 0x224   :  { %v469_v45 = vsel %vm466_vm5, %v467_v15, %v468_v23  ;;  %v196_v49 = vpop.f32.mrb[8].mxu0  ;;  %v256_v30 = vpop.f32.mrb[8].mxu1  ;;  %1581 = vmatprep.mubr.msk.f32.mxu1 %vm1762_vm2, %v1761_v40 }
 0x225   :  { %v888_v50 = vrot.slane %v882_v41, 1  ;;  %v475_v51 = vmul.f32 %v469_v45, %v366_v6  ;;  %v983_v52 = vrot.slane %v978_v42, 1  ;;  %v197_v53 = vadd.f32 %v196_v49, %v1979_v55  ;;  %v1522_v54 = vpop.f32.mrb[9].mxu0  ;;  %v1538_v57 = vpop.f32.mrb[9].mxu1 }
 0x226   :  { %v257_v58 = vadd.f32 %v256_v30, %v1982_v56  ;;  %v199_v59 = vpop.f32.mrb[10].mxu0  ;;  %v259_v60 = vpop.f32.mrb[10].mxu1  ;;  %v354_v41 = vadd.s32 1, %v1883_v63  ;;  %v352_v42 = vmul.u32 16, %v1883_v63 }
 0x227   :  { %v2018_v62 = vsel %vm466_vm5, %v887_v43, %v888_v50  ;;  %v370_v3 = vmul.f32 0.25, %v197_v53  ;;  %v1523_v4 = vpop.f32.mrb[11].mxu0  ;;  %v1539_v5 = vpop.f32.mrb[11].mxu1  ;;  %1582 = vmatmul.mubr.msk.f32.vlgmr.msra.gmra.mrb[18].mxu1 %vm24_vm0, %v475_v51  ;;  %v2022_v7 = vsel %vm466_vm5, %v982_v44, %v983_v52 }
 0x228   :  { %v470_v6 = vrot.slane %v257_v58, 1  ;;  %1584 = vmatprep.mubr.msk.f32.mxu1 %vm1762_vm2, %v1761_v40  ;;  %v355_v43 = vmul.u32 16, %v354_v41  ;;  %vm353_vm6 = vcmp.ge.s32.totalorder %v1881_v61, %v352_v42 }
 0x229   :  { %v2026_v55 = vmul.f32 %v877_v39, %v370_v3  ;;  %v2028_v56 = vmul.f32 %v370_v3, %v257_v58 }
 0x22a   :  { %v471_v9 = vsel %vm466_vm5, %v468_v23, %v470_v6  ;;  %v477_v10 = vmul.f32 %v470_v6, %v368_v29  ;;  %vm356_vm7 = vcmp.lt.s32.totalorder %v1881_v61, %v355_v43 }
 0x22b   :  { %v890_v11 = vrot.slane %v2026_v55, 1  ;;  %v985_v12 = vrot.slane %v2028_v56, 1  ;;  %v476_v13 = vmul.f32 %v471_v9, %v1988_v16  ;;  %v264_v16 = vsub.s32 4, %v1883_v63  ;;  %vm357_vm8 = vmand %vm353_vm6, %vm356_vm7  ;;  %v362_v55 = vld [vmem:[%s2261_s3 + $0x10] sm:$0xff] }
 0x22c   :  { %v2034_v17 = vpop.f32.mrb[12].mxu0  ;;  %v2078_v44 = vsel %vm357_vm8, 1.0, %v1761_v40 }
 0x22d   :  { %1585 = vmatmul.mubr.msk.f32.gmra.mrb[20].mxu1 %vm24_vm0, %v476_v13  ;;  %v1546_v18 = vpop.f32.mrb[13].mxu0  ;;  %v2040_v19 = vsel %vm466_vm5, %v888_v50, %v890_v11  ;;  %v2045_v20 = vsel %vm466_vm5, %v983_v52, %v985_v12  ;;  %v2056_v14 = vrot.slane %v1890_v8, %v264_v16  ;;  %1591 = vmatpush3.msk.msra.mxu0 %vm607_vm9, %v2078_v44 }
 0x22e   :  { %v2047_v21 = vpop.f32.mrb[14].mxu0  ;;  %1587 = vmatprep.mubr.msk.f32.mxu1 %vm1762_vm2, %v1761_v40  ;;  %1602 = vmatpush3.msk.msra.mxu1 %vm607_vm9, %v2078_v44 }
 0x22f   :  { %v1547_v24 = vpop.f32.mrb[15].mxu0  ;;  %1696 = vmatprep.subr.bf16.mxu1 %v1763_v48 }
 0x231   :  { %1588 = vmatmul.mubr.msk.f32.gmra.mrb[22].mxu1 %vm24_vm0, %v477_v10 }
 0x232   :  { %1603 = vmatprep.mubr.msk.f32.mxu1 %vm1762_vm2, %v1761_v40 }
 0x234   :  { %v308_v25 = vpop.f32.mrb[16].mxu0 }
 0x235   :  { %v2059_v26 = vadd.f32 %v308_v25, %v2056_v14  ;;  %v1550_v27 = vpop.f32.mrb[17].mxu0 }
 0x236   :  { %v311_v28 = vpop.f32.mrb[18].mxu0 }
 0x237   :  { %v312_v29 = vadd.f32 %v311_v28, %v2056_v14  ;;  %v1551_v22 = vpop.f32.mrb[19].mxu0  ;;  %v789_v31 = vrot.slane %v2059_v26, 1 }
 0x239   :  { %v790_v32 = vrot.slane %v312_v29, 1 }
 0x23b   :  { %v2064_v33 = vsel %vm466_vm5, %v789_v31, %v790_v32 }
 0x23c   :  { %v316_v34 = vpop.f32.mrb[20].mxu0 }
 0x23d   :  { %v317_v35 = vadd.f32 %v316_v34, %v2056_v14  ;;  %v1554_v36 = vpop.f32.mrb[21].mxu0 }
 0x23e   :  { %v319_v37 = vpop.f32.mrb[22].mxu0 }
 0x23f   :  { %v2067_v39 = vrot.slane %v317_v35, 1  ;;  %v1555_v15 = vpop.f32.mrb[23].mxu0 }
 0x241   :  { %v2071_v23 = vsel %vm466_vm5, %v790_v32, %v2067_v39 }
 0x2ee   :  { %v449_v45 = vpop.f32.mrb[12].mxu1 }
 0x2ef   :  { %v1566_v49 = vpop.f32.mrb[13].mxu1 }
 0x2f2   :  { %v454_v30 = vpop.f32.mrb[14].mxu1 }
 0x2f3   :  { %v1569_v50 = vpop.f32.mrb[15].mxu1 }
 0x2f6   :  { %v459_v51 = vpop.f32.mrb[16].mxu1 }
 0x2f7   :  { %v1572_v52 = vpop.f32.mrb[17].mxu1 }
 0x2fa   :  { %v553_v61 = vpop.f32.mrb[18].mxu1 }
 0x2fb   :  { %v567_v53 = vmax.f32 %v449_v45, %v553_v61  ;;  %v1583_v54 = vpop.f32.mrb[19].mxu1 }
 0x2fd   :  { %v570_v57 = vsub.f32 %v449_v45, %v567_v53  ;;  %v579_v58 = vsub.f32 %v553_v61, %v567_v53  ;;  %v361_v53 = vld [vmem:[%s2261_s3 + $0x8] sm:$0xff] }
 0x2ff   :  { %v573_v59 = vmul.f32 1.442695, %v570_v57  ;;  %v582_v60 = vmul.f32 1.442695, %v579_v58  ;;  %v2148_v57 = vadd.f32 %v2034_v17, %v2056_v14 }
 0x300   :  { %v558_v3 = vpop.f32.mrb[20].mxu1 }
 0x301   :  { %1722 = vpow2.f32 %v573_v59  ;;  %v568_v4 = vmax.f32 %v454_v30, %v558_v3  ;;  %v1586_v5 = vpop.f32.mrb[21].mxu1 }
 0x302   :  { %1724 = vpow2.f32 %v582_v60 }
 0x303   :  { %v571_v6 = vsub.f32 %v454_v30, %v568_v4  ;;  %v580_v9 = vsub.f32 %v558_v3, %v568_v4 }
 0x304   :  { %v563_v10 = vpop.f32.mrb[22].mxu1 }
 0x305   :  { %v575_v13 = vmul.f32 1.442695, %v571_v6  ;;  %v584_v18 = vmul.f32 1.442695, %v580_v9  ;;  %v569_v16 = vmax.f32 %v459_v51, %v563_v10  ;;  %v1589_v24 = vpop.f32.mrb[23].mxu1  ;;  %v2154_v9 = vadd.f32 %v2047_v21, %v2056_v14 }
 0x307   :  { %1726 = vpow2.f32 %v575_v13  ;;  %v572_v25 = vsub.f32 %v459_v51, %v569_v16  ;;  %v581_v27 = vsub.f32 %v563_v10, %v569_v16 }
 0x308   :  { %1728 = vpow2.f32 %v584_v18 }
 0x309   :  { %v577_v28 = vmul.f32 1.442695, %v572_v25  ;;  %v586_v29 = vmul.f32 1.442695, %v581_v27 }
 0x30b   :  { %v1723_v22 = vpop.eup %1722  ;;  %1730 = vpow2.f32 %v577_v28 }
 0x30c   :  { %v1725_v31 = vpop.eup %1724  ;;  %1732 = vpow2.f32 %v586_v29 }
 0x30d   :  { %v588_v32 = vadd.f32 %v1725_v31, %v1723_v22 }
 0x30f   :  { %1734 = vrcp.f32 %v588_v32 }
 0x311   :  { %v1727_v34 = vpop.eup %1726 }
 0x312   :  { %v1729_v35 = vpop.eup %1728 }
 0x313   :  { %v589_v36 = vadd.f32 %v1729_v35, %v1727_v34 }
 0x315   :  { %v1731_v37 = vpop.eup %1730  ;;  %1736 = vrcp.f32 %v589_v36 }
 0x316   :  { %v1733_v15 = vpop.eup %1732 }
 0x317   :  { %v590_v41 = vadd.f32 %v1733_v15, %v1731_v37 }
 0x319   :  { %v1735_v42 = vpop.eup %1734  ;;  %1738 = vrcp.f32 %v590_v41 }
 0x31a   :  { %v594_v43 = vmul.f32 %v1735_v42, %v1723_v22  ;;  %v694_v45 = vmul.f32 %v1735_v42, %v1725_v31 }
 0x31c   :  { %1593 = vmatmul.mubr.msk.f32.vlgmr.msra.gmra.mrb[24].mxu0 %vm597_vm10, %v594_v43  ;;  %1604 = vmatmul.mubr.msk.f32.vlgmr.msra.gmra.mrb[24].mxu1 %vm597_vm10, %v694_v45 }
 0x31d   :  { %1595 = vmatprep.mubr.msk.f32.mxu0 %vm1762_vm2, %v1761_v40  ;;  %1606 = vmatprep.mubr.msk.f32.mxu1 %vm1762_vm2, %v1761_v40 }
 0x31e   :  { %1698 = vmatpush3.bf16.msk.msra.mxu1 %vm1917_vm13, %v1764_v46 }
 0x31f   :  { %v1737_v49 = vpop.eup %1736  ;;  %1699 = vmatprep.subr.bf16.mxu1 %v1763_v48 }
 0x320   :  { %v595_v30 = vmul.f32 %v1737_v49, %v1727_v34  ;;  %v695_v50 = vmul.f32 %v1737_v49, %v1729_v35 }
 0x322   :  { %1596 = vmatmul.mubr.msk.f32.gmra.mrb[26].mxu0 %vm597_vm10, %v595_v30  ;;  %1607 = vmatmul.mubr.msk.f32.gmra.mrb[26].mxu1 %vm597_vm10, %v695_v50 }
 0x323   :  { %v1739_v51 = vpop.eup %1738  ;;  %1598 = vmatprep.mubr.msk.f32.mxu0 %vm1762_vm2, %v1761_v40  ;;  %1609 = vmatprep.mubr.msk.f32.mxu1 %vm1762_vm2, %v1761_v40 }
 0x324   :  { %v596_v52 = vmul.f32 %v1739_v51, %v1731_v37  ;;  %v696_v61 = vmul.f32 %v1739_v51, %v1733_v15  ;;  %1701 = vmatpush3.bf16.msk.msra.mxu1 %vm1946_vm3, %v1764_v46 }
 0x325   :  { %1654 = vmatprep.subr.mxu1 %v1761_v40 }
 0x326   :  { %1599 = vmatmul.mubr.msk.f32.gmra.mrb[28].mxu0 %vm597_vm10, %v596_v52  ;;  %1610 = vmatmul.mubr.msk.f32.gmra.mrb[28].mxu1 %vm597_vm10, %v696_v61 }
 0x327   :  { %1628 = vmatprep.mubr.msk.f32.mxu1 %vm1762_vm2, %v1761_v40 }
 0x32a   :  { %1629 = vmatmul.mubr.msk.f32.vlgmr.msra.gmra.mrb[30].mxu1 %vm24_vm0, %v2018_v62  ;;  %v360_v62 = vld [vmem:[%s2261_s3] sm:$0xff] }
 0x32b   :  { %1631 = vmatprep.mubr.msk.f32.mxu1 %vm1762_vm2, %v1761_v40  ;;  %1655 = vmatpush3.msk.msra.mxu1 %vm607_vm9, %v2078_v44  ;;  %v2130_v54 = vpack.c.bf16 %v361_v53, %v360_v62 }
 0x32d   :  { %1612 = vmatprep.subr.bf16.mxu0 %v2130_v54  ;;  %1676 = vmatprep.subr.bf16.mxu1 %v2130_v54 }
 0x32e   :  { %1632 = vmatmul.mubr.msk.f32.gmra.mrb[32].mxu1 %vm24_vm0, %v2040_v19  ;;  %1613 = vmatpush3.bf16.msra.mxu0 %v2130_v54 }
 0x32f   :  { %1634 = vmatprep.mubr.msk.f32.mxu1 %vm1762_vm2, %v1761_v40 }
 0x332   :  { %1635 = vmatmul.mubr.msk.f32.gmra.mrb[34].mxu1 %vm24_vm0, %v890_v11  ;;  %v363_v11 = vld [vmem:[%s2261_s3 + $0x18] sm:$0xff] }
 0x333   :  { %1656 = vmatprep.mubr.msk.f32.mxu1 %vm1762_vm2, %v1761_v40  ;;  %v2141_v19 = vpack.c.bf16 %v363_v11, %v362_v55 }
 0x335   :  { %1614 = vmatprep.subr.bf16.mxu0 %v2141_v19 }
 0x336   :  { %1615 = vmatpush3.bf16.msra.mxu0 %v2141_v19 }
 0x337   :  { %1702 = vmatprep.subr.bf16.mxu0 %v1763_v48 }
 0x3ef   :  { %v677_v58 = vpop.f32.mrb[24].mxu0  ;;  %v772_v59 = vpop.f32.mrb[24].mxu1 }
 0x3f0   :  { %v691_v60 = vmul.f32 %v677_v58, %v2148_v57  ;;  %v797_v3 = vmul.f32 %v2064_v33, %v772_v59  ;;  %v1594_v4 = vpop.f32.mrb[25].mxu0  ;;  %v1605_v5 = vpop.f32.mrb[25].mxu1 }
 0x3f2   :  { %v800_v6 = vadd.f32 %v797_v3, %v691_v60 }
 0x3f5   :  { %v682_v10 = vpop.f32.mrb[26].mxu0  ;;  %v777_v13 = vpop.f32.mrb[26].mxu1 }
 0x3f6   :  { %v692_v18 = vmul.f32 %v682_v10, %v2154_v9  ;;  %v798_v17 = vmul.f32 %v2071_v23, %v777_v13  ;;  %v1597_v16 = vpop.f32.mrb[27].mxu0  ;;  %v1608_v24 = vpop.f32.mrb[27].mxu1 }
 0x3f8   :  { %v801_v25 = vadd.f32 %v798_v17, %v692_v18 }
 0x3f9   :  { %v687_v27 = vpop.f32.mrb[28].mxu0  ;;  %v782_v28 = vpop.f32.mrb[28].mxu1 }
 0x3fa   :  { %v803_v29 = vpack.c.bf16 %v801_v25, %v800_v6  ;;  %v693_v22 = vmul.f32 %v687_v27, %v2059_v26  ;;  %v799_v31 = vmul.f32 %v2067_v39, %v782_v28  ;;  %v1600_v32 = vpop.f32.mrb[29].mxu0  ;;  %v1611_v34 = vpop.f32.mrb[29].mxu1 }
 0x3fc   :  { %v802_v21 = vadd.f32 %v799_v31, %v693_v22  ;;  %1616 = vmatprep.mubr.msk.bf16.mxu0 %vm24_vm0, %v803_v29 }
 0x3fd   :  { %v964_v14 = vpop.f32.mrb[30].mxu1 }
 0x3fe   :  { %v804_v35 = vpack.c.bf16 %v802_v21, %v802_v21  ;;  %v1630_v36 = vpop.f32.mrb[31].mxu1 }
 0x400   :  { %1617 = vmatmul.mubr.msk.bf16.vlgmr.msra.gmra.mrb[32].mxu0 %vm24_vm0, %v804_v35 }
 0x401   :  { %1704 = vmatpush3.bf16.msk.msra.mxu0 %vm1917_vm13, %v1764_v46  ;;  %v969_v37 = vpop.f32.mrb[32].mxu1  ;;  %1645 = vmatprep.mubr.msk.f32.mxu0 %vm1762_vm2, %v1761_v40 }
 0x402   :  { %v1633_v15 = vpop.f32.mrb[33].mxu1  ;;  %1705 = vmatprep.subr.bf16.mxu0 %v1763_v48  ;;  %v807_v48 = vsub.s32 5, %v1883_v63 }
 0x404   :  { %v2189_v38 = vrot.slane %v1890_v8, %v807_v48 }
 0x405   :  { %1707 = vmatpush3.bf16.msk.msra.mxu0 %vm1946_vm3, %v1764_v46  ;;  %v974_v41 = vpop.f32.mrb[34].mxu1 }
 0x406   :  { %v1636_v42 = vpop.f32.mrb[35].mxu1  ;;  %1665 = vmatprep.subr.mxu0 %v1761_v40 }
 0x408   :  { %1646 = vmatmul.mubr.msk.f32.vlgmr.msra.gmra.mrb[30].mxu0 %vm24_vm0, %v2022_v7 }
 0x409   :  { %1648 = vmatprep.mubr.msk.f32.mxu0 %vm1762_vm2, %v1761_v40  ;;  %1666 = vmatpush3.msk.msra.mxu0 %vm607_vm9, %v2078_v44 }
 0x40c   :  { %1649 = vmatmul.mubr.msk.f32.gmra.mrb[36].mxu0 %vm24_vm0, %v2045_v20 }
 0x40d   :  { %1651 = vmatprep.mubr.msk.f32.mxu0 %vm1762_vm2, %v1761_v40 }
 0x410   :  { %1652 = vmatmul.mubr.msk.f32.gmra.mrb[38].mxu0 %vm24_vm0, %v985_v12 }
 0x411   :  { %1667 = vmatprep.mubr.msk.f32.mxu0 %vm1762_vm2, %v1761_v40 }
 0x4d3   :  { %v1618_v46 = vpop.f32.mrb[32].mxu0 }
 0x4d4   :  { %v858_v47 = vadd.f32 %v1618_v46, %v2189_v38  ;;  %v849_v7 = vpop.f32.mrb[33].mxu0 }
 0x4d5   :  { %v850_v20 = vadd.f32 %v849_v7, %v2189_v38  ;;  %v1619_v44 = vpop.f32.mrb[34].mxu0 }
 0x4d6   :  { %v865_v56 = vadd.f32 %v858_v47, %v1798_v1  ;;  %v852_v43 = vpop.f32.mrb[35].mxu0 }
 0x4d7   :  { %v863_v12 = vadd.f32 %v850_v20, %v1793_v0  ;;  %v853_v45 = vadd.f32 %v852_v43, %v2189_v38 }
 0x4d8   :  { %869 = vst.msk [vmem:[%s2262_s4 + $0x10] sm:$0x1] %vm868_vm11, %v865_v56 }
 0x4d9   :  { %866 = vst.msk [vmem:[%s2262_s4] sm:$0xff] %vm24_vm0, %v863_v12  ;;  %v864_v63 = vadd.f32 %v853_v45, %v1803_v2 }
 0x4db   :  { %867 = vst.msk [vmem:[%s2262_s4 + $0x8] sm:$0xff] %vm24_vm0, %v864_v63  ;;  %v1059_v1 = vpop.f32.mrb[30].mxu0 }
 0x4dc   :  { %v1073_v0 = vmax.f32 %v964_v14, %v1059_v1  ;;  %v1647_v8 = vpop.f32.mrb[31].mxu0 }
 0x4de   :  { %v1076_v49 = vsub.f32 %v964_v14, %v1073_v0  ;;  %v1085_v30 = vsub.f32 %v1059_v1, %v1073_v0 }
 0x4df   :  { %v1064_v50 = vpop.f32.mrb[36].mxu0 }
 0x4e0   :  { %v1079_v51 = vmul.f32 1.442695, %v1076_v49  ;;  %v1088_v52 = vmul.f32 1.442695, %v1085_v30  ;;  %v1074_v61 = vmax.f32 %v969_v37, %v1064_v50  ;;  %v1650_v62 = vpop.f32.mrb[37].mxu0 }
 0x4e2   :  { %1740 = vpow2.f32 %v1079_v51  ;;  %v1077_v53 = vsub.f32 %v969_v37, %v1074_v61  ;;  %v1086_v55 = vsub.f32 %v1064_v50, %v1074_v61  ;;  %v1758_v61 = vld [vmem:[%s2258_s0 + $0x10] sm:$0xff] }
 0x4e3   :  { %1742 = vpow2.f32 %v1088_v52  ;;  %v1069_v2 = vpop.f32.mrb[38].mxu0 }
 0x4e4   :  { %v1081_v11 = vmul.f32 1.442695, %v1077_v53  ;;  %v1090_v58 = vmul.f32 1.442695, %v1086_v55  ;;  %v1075_v59 = vmax.f32 %v974_v41, %v1069_v2  ;;  %v1653_v60 = vpop.f32.mrb[39].mxu0 }
 0x4e6   :  { %1744 = vpow2.f32 %v1081_v11  ;;  %v1078_v3 = vsub.f32 %v974_v41, %v1075_v59  ;;  %v1087_v4 = vsub.f32 %v1069_v2, %v1075_v59 }
 0x4e7   :  { %1746 = vpow2.f32 %v1090_v58  ;;  %v1760_v58 = vld [vmem:[%s2258_s0 + $0x20] sm:$0x3] }
 0x4e8   :  { %v1083_v5 = vmul.f32 1.442695, %v1078_v3  ;;  %v1092_v6 = vmul.f32 1.442695, %v1087_v4 }
 0x4ea   :  { %1748 = vpow2.f32 %v1083_v5 }
 0x4eb   :  { %1750 = vpow2.f32 %v1092_v6 }
 0x4ec   :  { %v1741_v10 = vpop.eup %1740 }
 0x4ed   :  { %v1743_v13 = vpop.eup %1742 }
 0x4ee   :  { %v1094_v18 = vadd.f32 %v1743_v13, %v1741_v10 }
 0x4f0   :  { %v1745_v17 = vpop.eup %1744  ;;  %1752 = vrcp.f32 %v1094_v18 }
 0x4f1   :  { %v1747_v16 = vpop.eup %1746 }
 0x4f2   :  { %v1095_v24 = vadd.f32 %v1747_v16, %v1745_v17 }
 0x4f4   :  { %v1749_v25 = vpop.eup %1748  ;;  %1754 = vrcp.f32 %v1095_v24 }
 0x4f5   :  { %v1751_v27 = vpop.eup %1750 }
 0x4f6   :  { %v1096_v28 = vadd.f32 %v1751_v27, %v1749_v25 }
 0x4f8   :  { %1756 = vrcp.f32 %v1096_v28 }
 0x4fa   :  { %v1753_v29 = vpop.eup %1752 }
 0x4fb   :  { %v1100_v22 = vmul.f32 %v1753_v29, %v1741_v10  ;;  %v1195_v31 = vmul.f32 %v1753_v29, %v1743_v13 }
 0x4fd   :  { %1657 = vmatmul.mubr.msk.f32.vlgmr.msra.gmra.mrb[36].mxu1 %vm597_vm10, %v1100_v22  ;;  %1668 = vmatmul.mubr.msk.f32.vlgmr.msra.gmra.mrb[40].mxu0 %vm597_vm10, %v1195_v31 }
 0x4fe   :  { %v1755_v32 = vpop.eup %1754  ;;  %1659 = vmatprep.mubr.msk.f32.mxu1 %vm1762_vm2, %v1761_v40  ;;  %1670 = vmatprep.mubr.msk.f32.mxu0 %vm1762_vm2, %v1761_v40 }
 0x4ff   :  { %v1101_v34 = vmul.f32 %v1755_v32, %v1745_v17  ;;  %v1196_v21 = vmul.f32 %v1755_v32, %v1747_v16  ;;  %1677 = vmatpush3.bf16.msra.mxu1 %v2130_v54 }
 0x500   :  { %1678 = vmatprep.subr.bf16.mxu1 %v2141_v19 }
 0x501   :  { %1660 = vmatmul.mubr.msk.f32.gmra.mrb[38].mxu1 %vm597_vm10, %v1101_v34  ;;  %1671 = vmatmul.mubr.msk.f32.gmra.mrb[42].mxu0 %vm597_vm10, %v1196_v21 }
 0x502   :  { %v1757_v14 = vpop.eup %1756  ;;  %1662 = vmatprep.mubr.msk.f32.mxu1 %vm1762_vm2, %v1761_v40  ;;  %1673 = vmatprep.mubr.msk.f32.mxu0 %vm1762_vm2, %v1761_v40  ;;  %vm1363_vm2 = vcmask 261121  }
 0x503   :  { %v1102_v35 = vmul.f32 %v1757_v14, %v1749_v25  ;;  %v1197_v36 = vmul.f32 %v1757_v14, %v1751_v27  ;;  %1679 = vmatpush3.bf16.msra.mxu1 %v2141_v19 }
 0x505   :  { %1663 = vmatmul.mubr.msk.f32.gmra.mrb[40].mxu1 %vm597_vm10, %v1102_v35  ;;  %1674 = vmatmul.mubr.msk.f32.gmra.mrb[44].mxu0 %vm597_vm10, %v1197_v36 }
 0x5d0   :  { %v1178_v54 = vpop.f32.mrb[36].mxu1  ;;  %v1273_v37 = vpop.f32.mrb[40].mxu0 }
 0x5d1   :  { %v1192_v15 = vmul.f32 %v1178_v54, %v2148_v57  ;;  %v1287_v41 = vmul.f32 %v1273_v37, %v2064_v33  ;;  %v1658_v42 = vpop.f32.mrb[37].mxu1  ;;  %v1669_v48 = vpop.f32.mrb[41].mxu0 }
 0x5d3   :  { %v1290_v46 = vadd.f32 %v1287_v41, %v1192_v15 }
 0x5d4   :  { %v1183_v47 = vpop.f32.mrb[38].mxu1  ;;  %v1278_v7 = vpop.f32.mrb[42].mxu0 }
 0x5d5   :  { %v1193_v40 = vmul.f32 %v1183_v47, %v2154_v9  ;;  %v1288_v20 = vmul.f32 %v1278_v7, %v2071_v23  ;;  %v1661_v19 = vpop.f32.mrb[39].mxu1  ;;  %v1672_v44 = vpop.f32.mrb[43].mxu0 }
 0x5d7   :  { %v1291_v56 = vadd.f32 %v1288_v20, %v1193_v40 }
 0x5d8   :  { %v1188_v43 = vpop.f32.mrb[40].mxu1  ;;  %v1283_v12 = vpop.f32.mrb[44].mxu0 }
 0x5d9   :  { %v1293_v45 = vpack.c.bf16 %v1291_v56, %v1290_v46  ;;  %v1194_v63 = vmul.f32 %v1188_v43, %v2059_v26  ;;  %v1289_v57 = vmul.f32 %v1283_v12, %v2067_v39  ;;  %v1664_v33 = vpop.f32.mrb[41].mxu1  ;;  %v1675_v1 = vpop.f32.mrb[45].mxu0 }
 0x5db   :  { %v1292_v0 = vadd.f32 %v1289_v57, %v1194_v63  ;;  %1680 = vmatprep.mubr.msk.bf16.mxu1 %vm24_vm0, %v1293_v45 }
 0x5dd   :  { %v1294_v8 = vpack.c.bf16 %v1292_v0, %v1292_v0 }
 0x5df   :  { %1681 = vmatmul.mubr.msk.bf16.vlgmr.msra.gmra.mrb[44].mxu1 %vm24_vm0, %v1294_v8 }
 0x6b2   :  { %v1682_v9 = vpop.f32.mrb[44].mxu1 }
 0x6b3   :  { %v1335_v23 = vpop.f32.mrb[45].mxu1  ;;  %v1344_v49 = vadd.f32 %v1682_v9, %v2189_v38 }
 0x6b4   :  { %v1336_v30 = vadd.f32 %v1335_v23, %v2189_v38  ;;  %v1683_v50 = vpop.f32.mrb[46].mxu1 }
 0x6b5   :  { %v1338_v51 = vpop.f32.mrb[47].mxu1  ;;  %v1355_v39 = vrot.slane %v1344_v49, 7 }
 0x6b6   :  { %v1352_v52 = vrot.slane %v1336_v30, 7  ;;  %v1339_v26 = vadd.f32 %v1338_v51, %v2189_v38  ;;  %v1759_v38 = vld [vmem:[%s2258_s0 + $0x18] sm:$0xff] }
 0x6b8   :  { %v1360_v62 = vadd.f32 %v1758_v61, %v1352_v52  ;;  %v1353_v53 = vrot.slane %v1339_v26, 7 }
 0x6ba   :  { %1364 = vst.msk [vmem:[%s2262_s4 + $0x10] sm:$0xfe] %vm1363_vm2, %v1360_v62  ;;  %v1354_v55 = vsel %vm872_vm4, %v1352_v52, %v1353_v53  ;;  %v1356_v2 = vsel %vm872_vm4, %v1353_v53, %v1355_v39 }
 0x6bb   :  { %v1361_v11 = vadd.f32 %v1759_v38, %v1354_v55  ;;  %v1362_v59 = vadd.f32 %v1760_v58, %v1356_v2 }
 0x6bd   :  { %1365 = vst.msk [vmem:[%s2262_s4 + $0x18] sm:$0xff] %vm24_vm0, %v1361_v11 }
 0x6be   :  { %1366 = vst.msk [vmem:[%s2262_s4 + $0x20] sm:$0x3] %vm37_vm1, %v1362_v59 }

</bundles_post_ra>
